<compile_context>
chip_gen: v7x
topology: tpu7x:2x2x1
jax: 0.10.0
libtpu: 0.0.40
codegen_flags: <defaults>
</compile_context>

<pallas_src>
import functools

import numpy as np

import jax
import jax.numpy as jnp
from jax.experimental import pallas as pl
from jax.experimental.pallas import tpu as pltpu


_LANE = 128  # channel padding granularity (vreg lane width)


def _round_up(x, m):
    return ((x + m - 1) // m) * m


def _pad_channels(a, c_target, axis):
    pad = c_target - a.shape[axis]
    if pad == 0:
        return a
    widths = [(0, 0)] * a.ndim
    widths[axis] = (0, pad)
    return jnp.pad(a, widths)


def _fold_bn_np(gamma, beta, mean, var, eps=1e-5):
    scale = gamma / np.sqrt(var + eps)
    bias = beta - mean * scale
    return scale, bias


@functools.lru_cache(maxsize=1)
def _vmem_budgets():
    """(budget for tile sizing, vmem_limit_bytes) per TPU generation."""
    try:
        cap = int(pltpu.get_tpu_info().vmem_capacity_bytes)
    except Exception:
        cap = 64 * 1024 * 1024  # conservative (v7x-sized) fallback
    limit = min(int(cap * 0.8), 100 * 1024 * 1024)
    budget = max(limit - 8 * 1024 * 1024, limit // 2)
    return budget, limit


def _choose_tile_rows(L1, Q1, K, CinS, Cout_p, has_mapping, vmem_budget):
    """Largest multiple-of-8 output-row tile (<=1024) fitting the VMEM budget."""
    p = K // 2
    E = 2 * p + max(Q1 - 1, 0)
    # T-independent footprint: double-buffered weights, halo, bias table.
    fixed = 2 * Q1 * CinS * Cout_p * 2 + 2 * K * Cout_p * Cout_p * 2
    fixed += 2 * max(E, 1) * CinS * 2 + 2 * 8 * Cout_p * 4
    if has_mapping:
        fixed += 2 * CinS * Cout_p * 2
    cap = min(1024, _round_up(L1, 8))
    best = 8
    T = 8
    while T <= cap:
        T_h_pad = _round_up(T + 2 * p, 8)
        xw_rows = _round_up(T_h_pad + max(Q1 - 1, 0), 8)
        var = 2 * T * CinS * 2 + 2 * T * Cout_p * 2          # body + out (x2 buffers)
        var += xw_rows * CinS * 2 + T_h_pad * Cout_p * 2      # VMEM scratch
        if fixed + var <= vmem_budget:
            best = T
        T += 8
    return best


# ----------------------------------------------------------------------------
# Fused ResNet-block kernel.
#   body_ref : (T, s*Cin_p)        bf16  contiguous input tile (folded frame)
#   halo_ref : (E, s*Cin_p)        bf16  tiny per-tile halo (optional)
#   w1_ref   : (Q1, s*Cin_p, Cout_p) bf16  conv1 weights (BN1 scale folded in)
#   w2_ref   : (K, Cout_p, Cout_p)   bf16  conv2 weights (BN2 scale folded in)
#   ws_ref   : (s*Cin_p, Cout_p)     bf16  shortcut weights (only if mapping)
#   aff_ref  : (8, Cout_p) f32     rows 0..2 = [bias1, bias2, bias_map]
#   out_ref  : (T, Cout_p)         bf16
#   xw_ref   : (xw_rows, s*Cin_p)  bf16  VMEM scratch (body + halo window)
#   h_ref    : (T_h_pad, Cout_p)   bf16  VMEM scratch (post conv1+BN+ReLU)
# ----------------------------------------------------------------------------
def _make_block_kernel(*, K, Q1, T, T_h_pad, p, off_res, L1, E, xw_rows,
                       has_mapping, has_halo):
    def kernel(*refs):
        it = iter(refs)
        body_ref = next(it)
        halo_ref = next(it) if has_halo else None
        w1_ref = next(it)
        w2_ref = next(it)
        ws_ref = next(it) if has_mapping else None
        aff_ref = next(it)
        out_ref = next(it)
        xw_ref = next(it)
        h_ref = next(it)

        t = pl.program_id(1)

        # ---- assemble the contiguous input window (body + tiny halo) ----
        xw_ref[0:T, :] = body_ref[...]
        if has_halo:
            xw_ref[T:T + E, :] = halo_ref[...]
        if xw_rows > T + E:
            xw_ref[T + E:xw_rows, :] = jnp.zeros(
                (xw_rows - T - E, xw_ref.shape[1]), xw_ref.dtype)

        # ---- conv1 (stride folded, BN1 scale folded); value accumulation ----
        acc = jnp.dot(xw_ref[0:T_h_pad, :], w1_ref[0],
                      preferred_element_type=jnp.float32)
        for q in range(1, Q1):
            acc = acc + jnp.dot(xw_ref[q:q + T_h_pad, :], w1_ref[q],
                                preferred_element_type=jnp.float32)
        h = jnp.maximum(acc + aff_ref[0:1, :], 0.0)          # + bias1, ReLU
        h_ref[...] = h.astype(h_ref.dtype)

        # conv2 uses 'same' zero padding: h rows outside [0, L1) must be 0.
        # Only boundary tiles need the mask.
        @pl.when((t * T < p) | ((t + 1) * T + p > L1))
        def _():
            row = jax.lax.broadcasted_iota(jnp.int32, (T_h_pad, 1), 0) \
                + (t * T - p)
            valid = (row >= 0) & (row < L1)
            h_ref[...] = jnp.where(valid, h, 0.0).astype(h_ref.dtype)

        # ---- conv2 (stride 1, BN2 scale folded); value accumulation ----
        out = jnp.dot(h_ref[0:T, :], w2_ref[0],
                      preferred_element_type=jnp.float32)
        for k in range(1, K):
            out = out + jnp.dot(h_ref[k:k + T, :], w2_ref[k],
                                preferred_element_type=jnp.float32)

        # ---- shortcut ----
        if has_mapping:
            res = jnp.dot(xw_ref[off_res:off_res + T, :], ws_ref[...],
                          preferred_element_type=jnp.float32)
            res = res + aff_ref[2:3, :]                       # + bias_map
        else:
            res = xw_ref[off_res:off_res + T, :].astype(jnp.float32)

        # ---- bias2 + residual add + ReLU ----
        out_ref[...] = jnp.maximum(out + aff_ref[1:2, :] + res,
                                   0.0).astype(out_ref.dtype)

    return kernel


# ----------------------------------------------------------------------------
# One fused ResNet block. x: (N, L_in, Cin_p) bf16, channels padded to 128.
# Returns (N, L1, Cout_p) bf16.
# ----------------------------------------------------------------------------
def _resnet_block_pallas(x, blk, *, K, s, vmem_budget, vmem_limit):
    N, L_in, Cin_p = x.shape
    assert K % 2 == 1, "odd kernel_size only (see TODO)"
    assert L_in % s == 0, "sequence length must be divisible by the stride"
    p = K // 2
    L1 = L_in // s

    W1, W2, aff = blk["W1"], blk["W2"], blk["aff"]
    Q1, CinS, Cout_p = W1.shape
    assert CinS == s * Cin_p
    has_mapping = "Ws" in blk
    if not has_mapping:
        assert s == 1 and Cin_p == Cout_p

    # Geometry in the stride-folded ("output-rate") frame.
    P_l0 = s * ((p + s - 1) // s)        # left pad (orig frame), multiple of s
    P_l = P_l0 + p * s                   # + conv2 halo worth of rows
    off_res = P_l // s                   # shortcut row offset inside a tile
    E = 2 * p + Q1 - 1                   # halo rows per tile (folded frame)
    has_halo = E > 0

    # Per-generation tile sizing (balanced tiles, multiple of 8).
    T_max = _choose_tile_rows(L1, Q1, K, CinS, Cout_p, has_mapping, vmem_budget)
    nLt = -(-L1 // T_max)
    T = _round_up(-(-L1 // nLt), 8)
    T_h_pad = _round_up(T + 2 * p, 8)
    xw_rows = _round_up(T_h_pad + max(Q1 - 1, 0), 8)
    L1_pad = nLt * T

    # Folded input: pad once (small L pads), then a free row-major reshape.
    L_X = (nLt + (-(-E // T) if has_halo else 0)) * T     # multiple of T
    P_r = L_X * s - P_l - L_in
    x_pad = jnp.pad(x, ((0, 0), (P_l, P_r), (0, 0)))
    X = x_pad.reshape(N, L_X, CinS)

    args = [X]
    in_specs = [pl.BlockSpec((None, T, CinS), lambda n, t: (n, t, 0))]
    if has_halo:
        # Tiny per-tile halo (E rows) -- the only gathered data.
        hidx = (T * (jnp.arange(nLt) + 1))[:, None] + jnp.arange(E)[None, :]
        X_halo = jnp.take(X, hidx, axis=1)                 # (N, nLt, E, CinS)
        args.append(X_halo)
        in_specs.append(
            pl.BlockSpec((None, None, E, CinS), lambda n, t: (n, t, 0, 0)))
    args.append(W1)
    in_specs.append(pl.BlockSpec((Q1, CinS, Cout_p), lambda n, t: (0, 0, 0)))
    args.append(W2)
    in_specs.append(pl.BlockSpec((K, Cout_p, Cout_p), lambda n, t: (0, 0, 0)))
    if has_mapping:
        args.append(blk["Ws"])
        in_specs.append(pl.BlockSpec((CinS, Cout_p), lambda n, t: (0, 0)))
    args.append(aff)
    in_specs.append(pl.BlockSpec((8, Cout_p), lambda n, t: (0, 0)))

    kernel = _make_block_kernel(
        K=K, Q1=Q1, T=T, T_h_pad=T_h_pad, p=p, off_res=off_res, L1=L1, E=E,
        xw_rows=xw_rows, has_mapping=has_mapping, has_halo=has_halo)

    out = pl.pallas_call(
        kernel,
        out_shape=jax.ShapeDtypeStruct((N, L1_pad, Cout_p), jnp.bfloat16),
        grid=(N, nLt),
        in_specs=in_specs,
        out_specs=pl.BlockSpec((None, T, Cout_p), lambda n, t: (n, t, 0)),
        scratch_shapes=[pltpu.VMEM((xw_rows, CinS), jnp.bfloat16),
                        pltpu.VMEM((T_h_pad, Cout_p), jnp.bfloat16)],
        compiler_params=pltpu.CompilerParams(
            dimension_semantics=("parallel", "parallel"),
            vmem_limit_bytes=vmem_limit),
    )(*args)

    if L1_pad != L1:
        out = out[:, :L1, :]
    return out


# ----------------------------------------------------------------------------
# One-time parameter packing (hoisted out of the jitted forward).
# ----------------------------------------------------------------------------
def _pack_block_params(p_blk, cin, K, s, shortcut_pooling):
    c_out = p_blk["conv1_w"].shape[0]
    Cin_p = _round_up(cin, _LANE)
    Cout_p = _round_up(c_out, _LANE)
    p = K // 2
    P_l0 = s * ((p + s - 1) // s)
    base = P_l0 - p
    Q1 = (base + K - 1) // s + 1
    CinS = s * Cin_p

    sc1, bi1 = _fold_bn_np(*[np.asarray(a, np.float32) for a in p_blk["bn1"]])
    sc2, bi2 = _fold_bn_np(*[np.asarray(a, np.float32) for a in p_blk["bn2"]])

    # conv1 weights: (Cout, Cin, K) -> (K, Cin, Cout), BN1 scale folded, padded,
    # then re-laid out for the stride-folded frame.
    w1 = np.transpose(np.asarray(p_blk["conv1_w"], np.float32), (2, 1, 0))
    w1 = w1 * sc1[None, None, :]
    w1p = np.zeros((K, Cin_p, Cout_p), np.float32)
    w1p[:, :cin, :c_out] = w1
    W1r = np.zeros((Q1, CinS, Cout_p), np.float32)
    for q in range(Q1):
        for r in range(s):
            k = q * s + r - base
            if 0 <= k < K:
                W1r[q, r * Cin_p:(r + 1) * Cin_p, :] = w1p[k]

    w2 = np.transpose(np.asarray(p_blk["conv2_w"], np.float32), (2, 1, 0))
    w2 = w2 * sc2[None, None, :]
    W2 = np.zeros((K, Cout_p, Cout_p), np.float32)
    W2[:, :c_out, :c_out] = w2

    aff = np.zeros((8, Cout_p), np.float32)
    aff[0, :c_out] = bi1
    aff[1, :c_out] = bi2

    packed = {"W1": jnp.asarray(W1r).astype(jnp.bfloat16),
              "W2": jnp.asarray(W2).astype(jnp.bfloat16)}

    if p_blk["map"] is not None:
        scm, bim = _fold_bn_np(
            *[np.asarray(a, np.float32) for a in p_blk["map"]["bn"]])
        w1x1 = np.asarray(p_blk["map"]["w"], np.float32)[:, :, 0].T  # (Cin,Cout)
        w1x1 = w1x1 * scm[None, :]
        w1x1p = np.zeros((Cin_p, Cout_p), np.float32)
        w1x1p[:cin, :c_out] = w1x1
        if shortcut_pooling:
            # AvgPool1d(s, s) + Conv1d(1x1): weight w/s for each of s phases.
            Wsr = np.tile(w1x1p / s, (s, 1))
        else:
            # Conv1d(1x1, stride s): only phase 0 contributes.
            Wsr = np.concatenate(
                [w1x1p] + [np.zeros_like(w1x1p)] * (s - 1), axis=0)
        packed["Ws"] = jnp.asarray(Wsr).astype(jnp.bfloat16)
        aff[2, :c_out] = bim

    packed["aff"] = jnp.asarray(aff)
    return packed


def pack_stage_params(params, input_bands, kernel_size, stride,
                      shortcut_pooling=True):
    packed = []
    cin = input_bands
    for b, p_blk in enumerate(params):
        s = stride if b == 0 else 1
        packed.append(
            _pack_block_params(p_blk, cin, kernel_size, s, shortcut_pooling))
        cin = p_blk["conv1_w"].shape[0]
    return packed


# ----------------------------------------------------------------------------
# ResNetStage forward using the fused Pallas block kernel
# ----------------------------------------------------------------------------
@functools.partial(jax.jit,
                   static_argnames=("kernel_size", "stride", "output_bands"))
def resnet_stage_forward_pallas(x_ncl, packed, *, kernel_size, stride,
                                output_bands):
    N, C_in, L = x_ncl.shape
    vmem_budget, vmem_limit = _vmem_budgets()
    x = jnp.transpose(x_ncl, (0, 2, 1)).astype(jnp.bfloat16)   # (N, L, C)
    x = _pad_channels(x, _round_up(C_in, _LANE), 2)
    for b, blk in enumerate(packed):
        s = stride if b == 0 else 1
        x = _resnet_block_pallas(x, blk, K=kernel_size, s=s,
                                 vmem_budget=vmem_budget,
                                 vmem_limit=vmem_limit)
    x = x[..., :output_bands].astype(jnp.float32)
    return jnp.transpose(x, (0, 2, 1))                          # back to NCL


# ----------------------------------------------------------------------------
# Parameter initialization (deterministic, synthetic, PyTorch layouts)
# ----------------------------------------------------------------------------
def _init_bn(key, c):
    k1, k2, k3, k4 = jax.random.split(key, 4)
    gamma = 1.0 + 0.1 * jax.random.normal(k1, (c,), jnp.float32)
    beta = 0.1 * jax.random.normal(k2, (c,), jnp.float32)
    mean = 0.1 * jax.random.normal(k3, (c,), jnp.float32)
    var = 1.0 + 0.1 * jnp.abs(jax.random.normal(k4, (c,), jnp.float32))
    return (gamma, beta, mean, var)


def init_stage_params(key, c_in, c_out, n_blocks, stride, K,
                      shortcut_pooling=True):
    params = []
    for b in range(n_blocks):
        cin_b = c_in if b == 0 else c_out
        s_b = stride if b == 0 else 1
        key, k1, k2, k3, k4, k5, k6 = jax.random.split(key, 7)
        p = {
            "conv1_w": 0.1 * jax.random.normal(k1, (c_out, cin_b, K),
                                               jnp.float32),
            "bn1": _init_bn(k2, c_out),
            "conv2_w": 0.1 * jax.random.normal(k3, (c_out, c_out, K),
                                               jnp.float32),
            "bn2": _init_bn(k4, c_out),
            "map": None,
        }
        if cin_b != c_out or s_b != 1:
            p["map"] = {
                "w": 0.1 * jax.random.normal(k5, (c_out, cin_b, 1),
                                             jnp.float32),
                "bn": _init_bn(k6, c_out),
            }
        params.append(p)
    return params


# ----------------------------------------------------------------------------
# Pure-JAX reference (mirrors the PyTorch forward, eval-mode BN)
# ----------------------------------------------------------------------------
def resnet_stage_forward_ref(x, params, K, stride, shortcut_pooling=True):
    prec = jax.lax.Precision.HIGHEST

    def conv(x, w, s, pad):
        return jax.lax.conv_general_dilated(
            x, w, (s,), [(pad, pad)],
            dimension_numbers=("NCH", "OIH", "NCH"), precision=prec)

    def bn(x, stats, eps=1e-5):
        g, b, mu, v = stats
        return ((x - mu[None, :, None]) *
                (g / jnp.sqrt(v + eps))[None, :, None] + b[None, :, None])

    for i, p in enumerate(params):
        s = stride if i == 0 else 1
        out = jax.nn.relu(bn(conv(x, p["conv1_w"], s, K // 2), p["bn1"]))
        out = bn(conv(out, p["conv2_w"], 1, K // 2), p["bn2"])
        if p["map"] is None:
            shortcut = x
        else:
            if shortcut_pooling:
                N_, C_, L_ = x.shape
                Lo = L_ // s
                pooled = x[:, :, :Lo * s].reshape(N_, C_, Lo, s).mean(-1)
                shortcut = conv(pooled, p["map"]["w"], 1, 0)
            else:
                shortcut = conv(x, p["map"]["w"], s, 0)
            shortcut = bn(shortcut, p["map"]["bn"])
        x = jax.nn.relu(out + shortcut)
    return x


# ----------------------------------------------------------------------------
if __name__ == "__main__":
    key = jax.random.PRNGKey(0)
    kx, kp = jax.random.split(key)

    # Small shapes consistent with the module: 1-D conv input is (N, C, L).
    N, L = 2, 16
    input_bands, output_bands = 4, 8
    number_blocks, stride, kernel_size = 2, 2, 3
    shortcut_pooling = True

    x_ncl = jax.random.normal(kx, (N, input_bands, L), jnp.float32)
    params = init_stage_params(kp, input_bands, output_bands, number_blocks,
                               stride, kernel_size, shortcut_pooling)

    packed = pack_stage_params(params, input_bands, kernel_size, stride,
                               shortcut_pooling)

    out_pallas = resnet_stage_forward_pallas(
        x_ncl, packed, kernel_size=kernel_size, stride=stride,
        output_bands=output_bands)
    out_pallas = jax.block_until_ready(out_pallas)

    out_ref = resnet_stage_forward_ref(x_ncl, params, kernel_size, stride,
                                       shortcut_pooling)

    assert out_pallas.shape == out_ref.shape == (N, output_bands, L // stride)
    # bf16 activations/weights with f32 accumulation -> loosened tolerance.
    max_err = float(jnp.max(jnp.abs(out_pallas - out_ref)))
    assert max_err < 5e-2, f"max abs error too large: {max_err}"

    print("KERNEL_OK")
</pallas_src>

<mosaic_0001>
module attributes {stable_mosaic.version = 11 : i64} {
  func.func @kernel(%arg0: i32, %arg1: i32, %arg2: memref<1x8x256xbf16, #tpu.memory_space<vmem>>, %arg3: memref<1x1x3x256xbf16, #tpu.memory_space<vmem>>, %arg4: memref<2x256x128xbf16, #tpu.memory_space<vmem>>, %arg5: memref<3x128x128xbf16, #tpu.memory_space<vmem>>, %arg6: memref<256x128xbf16, #tpu.memory_space<vmem>>, %arg7: memref<8x128xf32, #tpu.memory_space<vmem>>, %arg8: memref<1x8x128xbf16, #tpu.memory_space<vmem>>, %arg9: memref<24x256xbf16, #tpu.memory_space<vmem>>, %arg10: memref<16x128xbf16, #tpu.memory_space<vmem>>) attributes {dimension_semantics = [#tpu.dimension_semantics<parallel>, #tpu.dimension_semantics<parallel>], iteration_bounds = array<i64: 2, 1>, scalar_prefetch = 0 : i64, scratch_operands = 2 : i64, tpu.core_type = #tpu.core_type<tc>, window_params = [{transform_indices = @transform_0, window_bounds = array<i64: 1, 8, 256>}, {transform_indices = @transform_1, window_bounds = array<i64: 1, 1, 3, 256>}, {pipeline_mode = #tpu.pipeline_mode<synchronous>, transform_indices = @transform_2, window_bounds = array<i64: 2, 256, 128>}, {pipeline_mode = #tpu.pipeline_mode<synchronous>, transform_indices = @transform_3, window_bounds = array<i64: 3, 128, 128>}, {pipeline_mode = #tpu.pipeline_mode<synchronous>, transform_indices = @transform_4, window_bounds = array<i64: 256, 128>}, {pipeline_mode = #tpu.pipeline_mode<synchronous>, transform_indices = @transform_5, window_bounds = array<i64: 8, 128>}, {transform_indices = @transform_6, window_bounds = array<i64: 1, 8, 128>}]} {
    %c0 = arith.constant 0 : index
    %c0_0 = arith.constant 0 : index
    %c0_1 = arith.constant 0 : index
    %0 = vector.load %arg2[%c0, %c0_0, %c0_1] : memref<1x8x256xbf16, #tpu.memory_space<vmem>>, vector<1x8x256xbf16>
    %1 = vector.shape_cast %0 : vector<1x8x256xbf16> to vector<8x256xbf16>
    %c0_2 = arith.constant 0 : index
    %c0_3 = arith.constant 0 : index
    %2 = vector.load %arg9[%c0_2, %c0_3] : memref<24x256xbf16, #tpu.memory_space<vmem>>, vector<8x256xbf16>
    tpu.vector_store %arg9[%c0_2, %c0_3], %1 {strides = array<i32>} : memref<24x256xbf16, #tpu.memory_space<vmem>>, vector<8x256xbf16>,
    %c0_4 = arith.constant 0 : index
    %c0_5 = arith.constant 0 : index
    %c0_6 = arith.constant 0 : index
    %c0_7 = arith.constant 0 : index
    %3 = vector.load %arg3[%c0_4, %c0_5, %c0_6, %c0_7] : memref<1x1x3x256xbf16, #tpu.memory_space<vmem>>, vector<1x1x3x256xbf16>
    %4 = vector.shape_cast %3 : vector<1x1x3x256xbf16> to vector<3x256xbf16>
    %c8 = arith.constant 8 : index
    %c0_8 = arith.constant 0 : index
    %5 = vector.load %arg9[%c8, %c0_8] : memref<24x256xbf16, #tpu.memory_space<vmem>>, vector<3x256xbf16>
    tpu.vector_store %arg9[%c8, %c0_8], %4 {strides = array<i32>} : memref<24x256xbf16, #tpu.memory_space<vmem>>, vector<3x256xbf16>,
    %cst = arith.constant 0.000000e+00 : bf16
    %6 = vector.broadcast %cst : bf16 to vector<13x256xbf16>
    %c11 = arith.constant 11 : index
    %c0_9 = arith.constant 0 : index
    %7 = vector.load %arg9[%c11, %c0_9] : memref<24x256xbf16, #tpu.memory_space<vmem>>, vector<13x256xbf16>
    tpu.vector_store %arg9[%c11, %c0_9], %6 {strides = array<i32>} : memref<24x256xbf16, #tpu.memory_space<vmem>>, vector<13x256xbf16>,
    %c0_10 = arith.constant 0 : index
    %c0_11 = arith.constant 0 : index
    %8 = vector.load %arg9[%c0_10, %c0_11] : memref<24x256xbf16, #tpu.memory_space<vmem>>, vector<16x256xbf16>
    %c0_12 = arith.constant 0 : index
    %c0_13 = arith.constant 0 : index
    %c0_14 = arith.constant 0 : index
    %9 = vector.load %arg4[%c0_12, %c0_13, %c0_14] : memref<2x256x128xbf16, #tpu.memory_space<vmem>>, vector<1x256x128xbf16>
    %10 = vector.shape_cast %9 : vector<1x256x128xbf16> to vector<256x128xbf16>
    %cst_15 = arith.constant dense<0.000000e+00> : vector<16x128xf32>
    %11 = tpu.matmul %8, %10, %cst_15 {dimension_numbers = #tpu.dot_dimension_numbers<[1], [0], [0], [1], [0, 0, 1, 1], [], []>} : vector<16x256xbf16>, vector<256x128xbf16>, vector<16x128xf32> -> vector<16x128xf32>
    %c1 = arith.constant 1 : index
    %c0_16 = arith.constant 0 : index
    %12 = vector.load %arg9[%c1, %c0_16] : memref<24x256xbf16, #tpu.memory_space<vmem>>, vector<16x256xbf16>
    %c1_17 = arith.constant 1 : index
    %c0_18 = arith.constant 0 : index
    %c0_19 = arith.constant 0 : index
    %13 = vector.load %arg4[%c1_17, %c0_18, %c0_19] : memref<2x256x128xbf16, #tpu.memory_space<vmem>>, vector<1x256x128xbf16>
    %14 = vector.shape_cast %13 : vector<1x256x128xbf16> to vector<256x128xbf16>
    %cst_20 = arith.constant dense<0.000000e+00> : vector<16x128xf32>
    %15 = tpu.matmul %12, %14, %cst_20 {dimension_numbers = #tpu.dot_dimension_numbers<[1], [0], [0], [1], [0, 0, 1, 1], [], []>} : vector<16x256xbf16>, vector<256x128xbf16>, vector<16x128xf32> -> vector<16x128xf32>
    %16 = arith.addf %11, %15 : vector<16x128xf32>
    %c0_21 = arith.constant 0 : index
    %c0_22 = arith.constant 0 : index
    %17 = vector.load %arg7[%c0_21, %c0_22] : memref<8x128xf32, #tpu.memory_space<vmem>>, vector<1x128xf32>
    %18 = vector.broadcast %17 : vector<1x128xf32> to vector<16x128xf32>
    %19 = arith.addf %16, %18 : vector<16x128xf32>
    %cst_23 = arith.constant 0.000000e+00 : f32
    %20 = vector.broadcast %cst_23 : f32 to vector<16x128xf32>
    %21 = arith.maximumf %19, %20 : vector<16x128xf32>
    %22 = arith.truncf %21 : vector<16x128xf32> to vector<16x128xbf16>
    %c0_24 = arith.constant 0 : index
    %c0_25 = arith.constant 0 : index
    %23 = vector.load %arg10[%c0_24, %c0_25] : memref<16x128xbf16, #tpu.memory_space<vmem>>, vector<16x128xbf16>
    tpu.vector_store %arg10[%c0_24, %c0_25], %22 {strides = array<i32>} : memref<16x128xbf16, #tpu.memory_space<vmem>>, vector<16x128xbf16>,
    %c8_i32 = arith.constant 8 : i32
    %24 = arith.muli %arg1, %c8_i32 : i32
    %c1_i32 = arith.constant 1 : i32
    %25 = arith.cmpi slt, %24, %c1_i32 : i32
    %c1_i32_26 = arith.constant 1 : i32
    %26 = arith.addi %arg1, %c1_i32_26 : i32
    %c8_i32_27 = arith.constant 8 : i32
    %27 = arith.muli %26, %c8_i32_27 : i32
    %c1_i32_28 = arith.constant 1 : i32
    %28 = arith.addi %27, %c1_i32_28 : i32
    %c8_i32_29 = arith.constant 8 : i32
    %29 = arith.cmpi sgt, %28, %c8_i32_29 : i32
    %30 = arith.ori %25, %29 : i1
    %31 = arith.extui %30 : i1 to i32
    %c0_i32 = arith.constant 0 : i32
    %32 = arith.cmpi ne, %31, %c0_i32 : i32
    scf.if %32 {
      %63 = tpu.iota {dimensions = array<i32: 0>} : vector<16x1xi32>
      %c8_i32_60 = arith.constant 8 : i32
      %64 = arith.muli %arg1, %c8_i32_60 : i32
      %c1_i32_61 = arith.constant 1 : i32
      %65 = arith.subi %64, %c1_i32_61 : i32
      %66 = vector.broadcast %65 : i32 to vector<16x1xi32>
      %67 = arith.addi %63, %66 : vector<16x1xi32>
      %c0_i32_62 = arith.constant 0 : i32
      %68 = vector.broadcast %c0_i32_62 : i32 to vector<16x1xi32>
      %69 = arith.cmpi sge, %67, %68 : vector<16x1xi32>
      %c8_i32_63 = arith.constant 8 : i32
      %70 = vector.broadcast %c8_i32_63 : i32 to vector<16x1xi32>
      %71 = arith.cmpi slt, %67, %70 : vector<16x1xi32>
      %72 = arith.andi %69, %71 : vector<16x1xi1>
      %cst_64 = arith.constant 0.000000e+00 : f32
      %73 = vector.shape_cast %72 : vector<16x1xi1> to vector<16x1xi1>
      %74 = vector.broadcast %73 : vector<16x1xi1> to vector<16x128xi1>
      %75 = vector.broadcast %cst_64 : f32 to vector<16x128xf32>
      %76 = arith.select %74, %21, %75 : vector<16x128xi1>, vector<16x128xf32>
      %77 = arith.truncf %76 : vector<16x128xf32> to vector<16x128xbf16>
      %c0_65 = arith.constant 0 : index
      %c0_66 = arith.constant 0 : index
      %78 = vector.load %arg10[%c0_65, %c0_66] : memref<16x128xbf16, #tpu.memory_space<vmem>>, vector<16x128xbf16>
      tpu.vector_store %arg10[%c0_65, %c0_66], %77 {strides = array<i32>} : memref<16x128xbf16, #tpu.memory_space<vmem>>, vector<16x128xbf16>,
    } else {
    }
    %c0_30 = arith.constant 0 : index
    %c0_31 = arith.constant 0 : index
    %33 = vector.load %arg10[%c0_30, %c0_31] : memref<16x128xbf16, #tpu.memory_space<vmem>>, vector<8x128xbf16>
    %c0_32 = arith.constant 0 : index
    %c0_33 = arith.constant 0 : index
    %c0_34 = arith.constant 0 : index
    %34 = vector.load %arg5[%c0_32, %c0_33, %c0_34] : memref<3x128x128xbf16, #tpu.memory_space<vmem>>, vector<1x128x128xbf16>
    %35 = vector.shape_cast %34 : vector<1x128x128xbf16> to vector<128x128xbf16>
    %cst_35 = arith.constant dense<0.000000e+00> : vector<8x128xf32>
    %36 = tpu.matmul %33, %35, %cst_35 {dimension_numbers = #tpu.dot_dimension_numbers<[1], [0], [0], [1], [0, 0, 1, 1], [], []>} : vector<8x128xbf16>, vector<128x128xbf16>, vector<8x128xf32> -> vector<8x128xf32>
    %c1_36 = arith.constant 1 : index
    %c0_37 = arith.constant 0 : index
    %37 = vector.load %arg10[%c1_36, %c0_37] : memref<16x128xbf16, #tpu.memory_space<vmem>>, vector<8x128xbf16>
    %c1_38 = arith.constant 1 : index
    %c0_39 = arith.constant 0 : index
    %c0_40 = arith.constant 0 : index
    %38 = vector.load %arg5[%c1_38, %c0_39, %c0_40] : memref<3x128x128xbf16, #tpu.memory_space<vmem>>, vector<1x128x128xbf16>
    %39 = vector.shape_cast %38 : vector<1x128x128xbf16> to vector<128x128xbf16>
    %cst_41 = arith.constant dense<0.000000e+00> : vector<8x128xf32>
    %40 = tpu.matmul %37, %39, %cst_41 {dimension_numbers = #tpu.dot_dimension_numbers<[1], [0], [0], [1], [0, 0, 1, 1], [], []>} : vector<8x128xbf16>, vector<128x128xbf16>, vector<8x128xf32> -> vector<8x128xf32>
    %41 = arith.addf %36, %40 : vector<8x128xf32>
    %c2 = arith.constant 2 : index
    %c0_42 = arith.constant 0 : index
    %42 = vector.load %arg10[%c2, %c0_42] : memref<16x128xbf16, #tpu.memory_space<vmem>>, vector<8x128xbf16>
    %c2_43 = arith.constant 2 : index
    %c0_44 = arith.constant 0 : index
    %c0_45 = arith.constant 0 : index
    %43 = vector.load %arg5[%c2_43, %c0_44, %c0_45] : memref<3x128x128xbf16, #tpu.memory_space<vmem>>, vector<1x128x128xbf16>
    %44 = vector.shape_cast %43 : vector<1x128x128xbf16> to vector<128x128xbf16>
    %cst_46 = arith.constant dense<0.000000e+00> : vector<8x128xf32>
    %45 = tpu.matmul %42, %44, %cst_46 {dimension_numbers = #tpu.dot_dimension_numbers<[1], [0], [0], [1], [0, 0, 1, 1], [], []>} : vector<8x128xbf16>, vector<128x128xbf16>, vector<8x128xf32> -> vector<8x128xf32>
    %46 = arith.addf %41, %45 : vector<8x128xf32>
    %c2_47 = arith.constant 2 : index
    %c0_48 = arith.constant 0 : index
    %47 = vector.load %arg9[%c2_47, %c0_48] : memref<24x256xbf16, #tpu.memory_space<vmem>>, vector<8x256xbf16>
    %c0_49 = arith.constant 0 : index
    %c0_50 = arith.constant 0 : index
    %48 = vector.load %arg6[%c0_49, %c0_50] : memref<256x128xbf16, #tpu.memory_space<vmem>>, vector<256x128xbf16>
    %cst_51 = arith.constant dense<0.000000e+00> : vector<8x128xf32>
    %49 = tpu.matmul %47, %48, %cst_51 {dimension_numbers = #tpu.dot_dimension_numbers<[1], [0], [0], [1], [0, 0, 1, 1], [], []>} : vector<8x256xbf16>, vector<256x128xbf16>, vector<8x128xf32> -> vector<8x128xf32>
    %c2_52 = arith.constant 2 : index
    %c0_53 = arith.constant 0 : index
    %50 = vector.load %arg7[%c2_52, %c0_53] : memref<8x128xf32, #tpu.memory_space<vmem>>, vector<1x128xf32>
    %51 = vector.broadcast %50 : vector<1x128xf32> to vector<8x128xf32>
    %52 = arith.addf %49, %51 : vector<8x128xf32>
    %c1_54 = arith.constant 1 : index
    %c0_55 = arith.constant 0 : index
    %53 = vector.load %arg7[%c1_54, %c0_55] : memref<8x128xf32, #tpu.memory_space<vmem>>, vector<1x128xf32>
    %54 = vector.broadcast %53 : vector<1x128xf32> to vector<8x128xf32>
    %55 = arith.addf %46, %54 : vector<8x128xf32>
    %56 = arith.addf %55, %52 : vector<8x128xf32>
    %cst_56 = arith.constant 0.000000e+00 : f32
    %57 = vector.broadcast %cst_56 : f32 to vector<8x128xf32>
    %58 = arith.maximumf %56, %57 : vector<8x128xf32>
    %59 = arith.truncf %58 : vector<8x128xf32> to vector<8x128xbf16>
    %c0_57 = arith.constant 0 : index
    %c0_58 = arith.constant 0 : index
    %c0_59 = arith.constant 0 : index
    %60 = vector.load %arg8[%c0_57, %c0_58, %c0_59] : memref<1x8x128xbf16, #tpu.memory_space<vmem>>, vector<1x8x128xbf16>
    %61 = vector.shape_cast %60 : vector<1x8x128xbf16> to vector<8x128xbf16>
    %62 = vector.shape_cast %59 : vector<8x128xbf16> to vector<1x8x128xbf16>
    tpu.vector_store %arg8[%c0_57, %c0_58, %c0_59], %62 {strides = array<i32>} : memref<1x8x128xbf16, #tpu.memory_space<vmem>>, vector<1x8x128xbf16>,
    return
  }
  func.func @transform_0(%arg0: i32, %arg1: i32) -> (i32, i32, i32) {
    %c0_i32 = arith.constant 0 : i32
    %c0_i32_0 = arith.constant 0 : i32
    return %arg0, %arg1, %c0_i32 : i32, i32, i32
  }
  func.func @transform_1(%arg0: i32, %arg1: i32) -> (i32, i32, i32, i32) {
    %c0_i32 = arith.constant 0 : i32
    %c0_i32_0 = arith.constant 0 : i32
    %c0_i32_1 = arith.constant 0 : i32
    return %arg0, %arg1, %c0_i32, %c0_i32_0 : i32, i32, i32, i32
  }
  func.func @transform_2(%arg0: i32, %arg1: i32) -> (i32, i32, i32) {
    %c0_i32 = arith.constant 0 : i32
    %c0_i32_0 = arith.constant 0 : i32
    %c0_i32_1 = arith.constant 0 : i32
    %c0_i32_2 = arith.constant 0 : i32
    return %c0_i32, %c0_i32_0, %c0_i32_1 : i32, i32, i32
  }
  func.func @transform_3(%arg0: i32, %arg1: i32) -> (i32, i32, i32) {
    %c0_i32 = arith.constant 0 : i32
    %c0_i32_0 = arith.constant 0 : i32
    %c0_i32_1 = arith.constant 0 : i32
    %c0_i32_2 = arith.constant 0 : i32
    return %c0_i32, %c0_i32_0, %c0_i32_1 : i32, i32, i32
  }
  func.func @transform_4(%arg0: i32, %arg1: i32) -> (i32, i32) {
    %c0_i32 = arith.constant 0 : i32
    %c0_i32_0 = arith.constant 0 : i32
    %c0_i32_1 = arith.constant 0 : i32
    return %c0_i32, %c0_i32_0 : i32, i32
  }
  func.func @transform_5(%arg0: i32, %arg1: i32) -> (i32, i32) {
    %c0_i32 = arith.constant 0 : i32
    %c0_i32_0 = arith.constant 0 : i32
    %c0_i32_1 = arith.constant 0 : i32
    return %c0_i32, %c0_i32_0 : i32, i32
  }
  func.func @transform_6(%arg0: i32, %arg1: i32) -> (i32, i32, i32) {
    %c0_i32 = arith.constant 0 : i32
    %c0_i32_0 = arith.constant 0 : i32
    return %arg0, %arg1, %c0_i32 : i32, i32, i32
  }
}

module attributes {stable_mosaic.version = 11 : i64} {
  func.func @kernel(%arg0: i32, %arg1: i32, %arg2: memref<1x8x128xbf16, #tpu.memory_space<vmem>>, %arg3: memref<1x1x4x128xbf16, #tpu.memory_space<vmem>>, %arg4: memref<3x128x128xbf16, #tpu.memory_space<vmem>>, %arg5: memref<3x128x128xbf16, #tpu.memory_space<vmem>>, %arg6: memref<8x128xf32, #tpu.memory_space<vmem>>, %arg7: memref<1x8x128xbf16, #tpu.memory_space<vmem>>, %arg8: memref<24x128xbf16, #tpu.memory_space<vmem>>, %arg9: memref<16x128xbf16, #tpu.memory_space<vmem>>) attributes {dimension_semantics = [#tpu.dimension_semantics<parallel>, #tpu.dimension_semantics<parallel>], iteration_bounds = array<i64: 2, 1>, scalar_prefetch = 0 : i64, scratch_operands = 2 : i64, tpu.core_type = #tpu.core_type<tc>, window_params = [{transform_indices = @transform_0, window_bounds = array<i64: 1, 8, 128>}, {transform_indices = @transform_1, window_bounds = array<i64: 1, 1, 4, 128>}, {pipeline_mode = #tpu.pipeline_mode<synchronous>, transform_indices = @transform_2, window_bounds = array<i64: 3, 128, 128>}, {pipeline_mode = #tpu.pipeline_mode<synchronous>, transform_indices = @transform_3, window_bounds = array<i64: 3, 128, 128>}, {pipeline_mode = #tpu.pipeline_mode<synchronous>, transform_indices = @transform_4, window_bounds = array<i64: 8, 128>}, {transform_indices = @transform_5, window_bounds = array<i64: 1, 8, 128>}]} {
    %c0 = arith.constant 0 : index
    %c0_0 = arith.constant 0 : index
    %c0_1 = arith.constant 0 : index
    %0 = vector.load %arg2[%c0, %c0_0, %c0_1] : memref<1x8x128xbf16, #tpu.memory_space<vmem>>, vector<1x8x128xbf16>
    %1 = vector.shape_cast %0 : vector<1x8x128xbf16> to vector<8x128xbf16>
    %c0_2 = arith.constant 0 : index
    %c0_3 = arith.constant 0 : index
    %2 = vector.load %arg8[%c0_2, %c0_3] : memref<24x128xbf16, #tpu.memory_space<vmem>>, vector<8x128xbf16>
    tpu.vector_store %arg8[%c0_2, %c0_3], %1 {strides = array<i32>} : memref<24x128xbf16, #tpu.memory_space<vmem>>, vector<8x128xbf16>,
    %c0_4 = arith.constant 0 : index
    %c0_5 = arith.constant 0 : index
    %c0_6 = arith.constant 0 : index
    %c0_7 = arith.constant 0 : index
    %3 = vector.load %arg3[%c0_4, %c0_5, %c0_6, %c0_7] : memref<1x1x4x128xbf16, #tpu.memory_space<vmem>>, vector<1x1x4x128xbf16>
    %4 = vector.shape_cast %3 : vector<1x1x4x128xbf16> to vector<4x128xbf16>
    %c8 = arith.constant 8 : index
    %c0_8 = arith.constant 0 : index
    %5 = vector.load %arg8[%c8, %c0_8] : memref<24x128xbf16, #tpu.memory_space<vmem>>, vector<4x128xbf16>
    tpu.vector_store %arg8[%c8, %c0_8], %4 {strides = array<i32>} : memref<24x128xbf16, #tpu.memory_space<vmem>>, vector<4x128xbf16>,
    %cst = arith.constant 0.000000e+00 : bf16
    %6 = vector.broadcast %cst : bf16 to vector<12x128xbf16>
    %c12 = arith.constant 12 : index
    %c0_9 = arith.constant 0 : index
    %7 = vector.load %arg8[%c12, %c0_9] : memref<24x128xbf16, #tpu.memory_space<vmem>>, vector<12x128xbf16>
    tpu.vector_store %arg8[%c12, %c0_9], %6 {strides = array<i32>} : memref<24x128xbf16, #tpu.memory_space<vmem>>, vector<12x128xbf16>,
    %c0_10 = arith.constant 0 : index
    %c0_11 = arith.constant 0 : index
    %8 = vector.load %arg8[%c0_10, %c0_11] : memref<24x128xbf16, #tpu.memory_space<vmem>>, vector<16x128xbf16>
    %c0_12 = arith.constant 0 : index
    %c0_13 = arith.constant 0 : index
    %c0_14 = arith.constant 0 : index
    %9 = vector.load %arg4[%c0_12, %c0_13, %c0_14] : memref<3x128x128xbf16, #tpu.memory_space<vmem>>, vector<1x128x128xbf16>
    %10 = vector.shape_cast %9 : vector<1x128x128xbf16> to vector<128x128xbf16>
    %cst_15 = arith.constant dense<0.000000e+00> : vector<16x128xf32>
    %11 = tpu.matmul %8, %10, %cst_15 {dimension_numbers = #tpu.dot_dimension_numbers<[1], [0], [0], [1], [0, 0, 1, 1], [], []>} : vector<16x128xbf16>, vector<128x128xbf16>, vector<16x128xf32> -> vector<16x128xf32>
    %c1 = arith.constant 1 : index
    %c0_16 = arith.constant 0 : index
    %12 = vector.load %arg8[%c1, %c0_16] : memref<24x128xbf16, #tpu.memory_space<vmem>>, vector<16x128xbf16>
    %c1_17 = arith.constant 1 : index
    %c0_18 = arith.constant 0 : index
    %c0_19 = arith.constant 0 : index
    %13 = vector.load %arg4[%c1_17, %c0_18, %c0_19] : memref<3x128x128xbf16, #tpu.memory_space<vmem>>, vector<1x128x128xbf16>
    %14 = vector.shape_cast %13 : vector<1x128x128xbf16> to vector<128x128xbf16>
    %cst_20 = arith.constant dense<0.000000e+00> : vector<16x128xf32>
    %15 = tpu.matmul %12, %14, %cst_20 {dimension_numbers = #tpu.dot_dimension_numbers<[1], [0], [0], [1], [0, 0, 1, 1], [], []>} : vector<16x128xbf16>, vector<128x128xbf16>, vector<16x128xf32> -> vector<16x128xf32>
    %16 = arith.addf %11, %15 : vector<16x128xf32>
    %c2 = arith.constant 2 : index
    %c0_21 = arith.constant 0 : index
    %17 = vector.load %arg8[%c2, %c0_21] : memref<24x128xbf16, #tpu.memory_space<vmem>>, vector<16x128xbf16>
    %c2_22 = arith.constant 2 : index
    %c0_23 = arith.constant 0 : index
    %c0_24 = arith.constant 0 : index
    %18 = vector.load %arg4[%c2_22, %c0_23, %c0_24] : memref<3x128x128xbf16, #tpu.memory_space<vmem>>, vector<1x128x128xbf16>
    %19 = vector.shape_cast %18 : vector<1x128x128xbf16> to vector<128x128xbf16>
    %cst_25 = arith.constant dense<0.000000e+00> : vector<16x128xf32>
    %20 = tpu.matmul %17, %19, %cst_25 {dimension_numbers = #tpu.dot_dimension_numbers<[1], [0], [0], [1], [0, 0, 1, 1], [], []>} : vector<16x128xbf16>, vector<128x128xbf16>, vector<16x128xf32> -> vector<16x128xf32>
    %21 = arith.addf %16, %20 : vector<16x128xf32>
    %c0_26 = arith.constant 0 : index
    %c0_27 = arith.constant 0 : index
    %22 = vector.load %arg6[%c0_26, %c0_27] : memref<8x128xf32, #tpu.memory_space<vmem>>, vector<1x128xf32>
    %23 = vector.broadcast %22 : vector<1x128xf32> to vector<16x128xf32>
    %24 = arith.addf %21, %23 : vector<16x128xf32>
    %cst_28 = arith.constant 0.000000e+00 : f32
    %25 = vector.broadcast %cst_28 : f32 to vector<16x128xf32>
    %26 = arith.maximumf %24, %25 : vector<16x128xf32>
    %27 = arith.truncf %26 : vector<16x128xf32> to vector<16x128xbf16>
    %c0_29 = arith.constant 0 : index
    %c0_30 = arith.constant 0 : index
    %28 = vector.load %arg9[%c0_29, %c0_30] : memref<16x128xbf16, #tpu.memory_space<vmem>>, vector<16x128xbf16>
    tpu.vector_store %arg9[%c0_29, %c0_30], %27 {strides = array<i32>} : memref<16x128xbf16, #tpu.memory_space<vmem>>, vector<16x128xbf16>,
    %c8_i32 = arith.constant 8 : i32
    %29 = arith.muli %arg1, %c8_i32 : i32
    %c1_i32 = arith.constant 1 : i32
    %30 = arith.cmpi slt, %29, %c1_i32 : i32
    %c1_i32_31 = arith.constant 1 : i32
    %31 = arith.addi %arg1, %c1_i32_31 : i32
    %c8_i32_32 = arith.constant 8 : i32
    %32 = arith.muli %31, %c8_i32_32 : i32
    %c1_i32_33 = arith.constant 1 : i32
    %33 = arith.addi %32, %c1_i32_33 : i32
    %c8_i32_34 = arith.constant 8 : i32
    %34 = arith.cmpi sgt, %33, %c8_i32_34 : i32
    %35 = arith.ori %30, %34 : i1
    %36 = arith.extui %35 : i1 to i32
    %c0_i32 = arith.constant 0 : i32
    %37 = arith.cmpi ne, %36, %c0_i32 : i32
    scf.if %37 {
      %64 = tpu.iota {dimensions = array<i32: 0>} : vector<16x1xi32>
      %c8_i32_61 = arith.constant 8 : i32
      %65 = arith.muli %arg1, %c8_i32_61 : i32
      %c1_i32_62 = arith.constant 1 : i32
      %66 = arith.subi %65, %c1_i32_62 : i32
      %67 = vector.broadcast %66 : i32 to vector<16x1xi32>
      %68 = arith.addi %64, %67 : vector<16x1xi32>
      %c0_i32_63 = arith.constant 0 : i32
      %69 = vector.broadcast %c0_i32_63 : i32 to vector<16x1xi32>
      %70 = arith.cmpi sge, %68, %69 : vector<16x1xi32>
      %c8_i32_64 = arith.constant 8 : i32
      %71 = vector.broadcast %c8_i32_64 : i32 to vector<16x1xi32>
      %72 = arith.cmpi slt, %68, %71 : vector<16x1xi32>
      %73 = arith.andi %70, %72 : vector<16x1xi1>
      %cst_65 = arith.constant 0.000000e+00 : f32
      %74 = vector.shape_cast %73 : vector<16x1xi1> to vector<16x1xi1>
      %75 = vector.broadcast %74 : vector<16x1xi1> to vector<16x128xi1>
      %76 = vector.broadcast %cst_65 : f32 to vector<16x128xf32>
      %77 = arith.select %75, %26, %76 : vector<16x128xi1>, vector<16x128xf32>
      %78 = arith.truncf %77 : vector<16x128xf32> to vector<16x128xbf16>
      %c0_66 = arith.constant 0 : index
      %c0_67 = arith.constant 0 : index
      %79 = vector.load %arg9[%c0_66, %c0_67] : memref<16x128xbf16, #tpu.memory_space<vmem>>, vector<16x128xbf16>
      tpu.vector_store %arg9[%c0_66, %c0_67], %78 {strides = array<i32>} : memref<16x128xbf16, #tpu.memory_space<vmem>>, vector<16x128xbf16>,
    } else {
    }
    %c0_35 = arith.constant 0 : index
    %c0_36 = arith.constant 0 : index
    %38 = vector.load %arg9[%c0_35, %c0_36] : memref<16x128xbf16, #tpu.memory_space<vmem>>, vector<8x128xbf16>
    %c0_37 = arith.constant 0 : index
    %c0_38 = arith.constant 0 : index
    %c0_39 = arith.constant 0 : index
    %39 = vector.load %arg5[%c0_37, %c0_38, %c0_39] : memref<3x128x128xbf16, #tpu.memory_space<vmem>>, vector<1x128x128xbf16>
    %40 = vector.shape_cast %39 : vector<1x128x128xbf16> to vector<128x128xbf16>
    %cst_40 = arith.constant dense<0.000000e+00> : vector<8x128xf32>
    %41 = tpu.matmul %38, %40, %cst_40 {dimension_numbers = #tpu.dot_dimension_numbers<[1], [0], [0], [1], [0, 0, 1, 1], [], []>} : vector<8x128xbf16>, vector<128x128xbf16>, vector<8x128xf32> -> vector<8x128xf32>
    %c1_41 = arith.constant 1 : index
    %c0_42 = arith.constant 0 : index
    %42 = vector.load %arg9[%c1_41, %c0_42] : memref<16x128xbf16, #tpu.memory_space<vmem>>, vector<8x128xbf16>
    %c1_43 = arith.constant 1 : index
    %c0_44 = arith.constant 0 : index
    %c0_45 = arith.constant 0 : index
    %43 = vector.load %arg5[%c1_43, %c0_44, %c0_45] : memref<3x128x128xbf16, #tpu.memory_space<vmem>>, vector<1x128x128xbf16>
    %44 = vector.shape_cast %43 : vector<1x128x128xbf16> to vector<128x128xbf16>
    %cst_46 = arith.constant dense<0.000000e+00> : vector<8x128xf32>
    %45 = tpu.matmul %42, %44, %cst_46 {dimension_numbers = #tpu.dot_dimension_numbers<[1], [0], [0], [1], [0, 0, 1, 1], [], []>} : vector<8x128xbf16>, vector<128x128xbf16>, vector<8x128xf32> -> vector<8x128xf32>
    %46 = arith.addf %41, %45 : vector<8x128xf32>
    %c2_47 = arith.constant 2 : index
    %c0_48 = arith.constant 0 : index
    %47 = vector.load %arg9[%c2_47, %c0_48] : memref<16x128xbf16, #tpu.memory_space<vmem>>, vector<8x128xbf16>
    %c2_49 = arith.constant 2 : index
    %c0_50 = arith.constant 0 : index
    %c0_51 = arith.constant 0 : index
    %48 = vector.load %arg5[%c2_49, %c0_50, %c0_51] : memref<3x128x128xbf16, #tpu.memory_space<vmem>>, vector<1x128x128xbf16>
    %49 = vector.shape_cast %48 : vector<1x128x128xbf16> to vector<128x128xbf16>
    %cst_52 = arith.constant dense<0.000000e+00> : vector<8x128xf32>
    %50 = tpu.matmul %47, %49, %cst_52 {dimension_numbers = #tpu.dot_dimension_numbers<[1], [0], [0], [1], [0, 0, 1, 1], [], []>} : vector<8x128xbf16>, vector<128x128xbf16>, vector<8x128xf32> -> vector<8x128xf32>
    %51 = arith.addf %46, %50 : vector<8x128xf32>
    %c2_53 = arith.constant 2 : index
    %c0_54 = arith.constant 0 : index
    %52 = vector.load %arg8[%c2_53, %c0_54] : memref<24x128xbf16, #tpu.memory_space<vmem>>, vector<8x128xbf16>
    %53 = arith.extf %52 : vector<8x128xbf16> to vector<8x128xf32>
    %c1_55 = arith.constant 1 : index
    %c0_56 = arith.constant 0 : index
    %54 = vector.load %arg6[%c1_55, %c0_56] : memref<8x128xf32, #tpu.memory_space<vmem>>, vector<1x128xf32>
    %55 = vector.broadcast %54 : vector<1x128xf32> to vector<8x128xf32>
    %56 = arith.addf %51, %55 : vector<8x128xf32>
    %57 = arith.addf %56, %53 : vector<8x128xf32>
    %cst_57 = arith.constant 0.000000e+00 : f32
    %58 = vector.broadcast %cst_57 : f32 to vector<8x128xf32>
    %59 = arith.maximumf %57, %58 : vector<8x128xf32>
    %60 = arith.truncf %59 : vector<8x128xf32> to vector<8x128xbf16>
    %c0_58 = arith.constant 0 : index
    %c0_59 = arith.constant 0 : index
    %c0_60 = arith.constant 0 : index
    %61 = vector.load %arg7[%c0_58, %c0_59, %c0_60] : memref<1x8x128xbf16, #tpu.memory_space<vmem>>, vector<1x8x128xbf16>
    %62 = vector.shape_cast %61 : vector<1x8x128xbf16> to vector<8x128xbf16>
    %63 = vector.shape_cast %60 : vector<8x128xbf16> to vector<1x8x128xbf16>
    tpu.vector_store %arg7[%c0_58, %c0_59, %c0_60], %63 {strides = array<i32>} : memref<1x8x128xbf16, #tpu.memory_space<vmem>>, vector<1x8x128xbf16>,
    return
  }
  func.func @transform_0(%arg0: i32, %arg1: i32) -> (i32, i32, i32) {
    %c0_i32 = arith.constant 0 : i32
    %c0_i32_0 = arith.constant 0 : i32
    return %arg0, %arg1, %c0_i32 : i32, i32, i32
  }
  func.func @transform_1(%arg0: i32, %arg1: i32) -> (i32, i32, i32, i32) {
    %c0_i32 = arith.constant 0 : i32
    %c0_i32_0 = arith.constant 0 : i32
    %c0_i32_1 = arith.constant 0 : i32
    return %arg0, %arg1, %c0_i32, %c0_i32_0 : i32, i32, i32, i32
  }
  func.func @transform_2(%arg0: i32, %arg1: i32) -> (i32, i32, i32) {
    %c0_i32 = arith.constant 0 : i32
    %c0_i32_0 = arith.constant 0 : i32
    %c0_i32_1 = arith.constant 0 : i32
    %c0_i32_2 = arith.constant 0 : i32
    return %c0_i32, %c0_i32_0, %c0_i32_1 : i32, i32, i32
  }
  func.func @transform_3(%arg0: i32, %arg1: i32) -> (i32, i32, i32) {
    %c0_i32 = arith.constant 0 : i32
    %c0_i32_0 = arith.constant 0 : i32
    %c0_i32_1 = arith.constant 0 : i32
    %c0_i32_2 = arith.constant 0 : i32
    return %c0_i32, %c0_i32_0, %c0_i32_1 : i32, i32, i32
  }
  func.func @transform_4(%arg0: i32, %arg1: i32) -> (i32, i32) {
    %c0_i32 = arith.constant 0 : i32
    %c0_i32_0 = arith.constant 0 : i32
    %c0_i32_1 = arith.constant 0 : i32
    return %c0_i32, %c0_i32_0 : i32, i32
  }
  func.func @transform_5(%arg0: i32, %arg1: i32) -> (i32, i32, i32) {
    %c0_i32 = arith.constant 0 : i32
    %c0_i32_0 = arith.constant 0 : i32
    return %arg0, %arg1, %c0_i32 : i32, i32, i32
  }
}

</mosaic_0001>

<bundles_post_ra>
// kernel: resnet_stage_forward_pallas.3
= control target key start
LH: loop header
LB: loop body
LE: loop exit
PB: predicated region body
PF: predicated region fallthrough
CT: control target
= control target key end

     0   :  { %s1574_s18 = smov 0   ;;  %s1576_s19 = smov 0   ;;  %s1833_s0 = inlined_call_operand.vmem [shape: bf16[2,16,128], index: 0, kind: input, shape index: {}]   ;;  %s1834_s1 = inlined_call_operand.vmem [shape: bf16[2,1,4,128], index: 1, kind: input, shape index: {}]   ;;  %s1835_s2 = inlined_call_operand.vmem [shape: bf16[3,128,128], index: 2, kind: input, shape index: {}]   ;;  %s1836_s3 = inlined_call_operand.vmem [shape: bf16[3,128,128], index: 3, kind: input, shape index: {}]   ;;  %s1837_s4 = inlined_call_operand.vmem [shape: f32[8,128], index: 4, kind: input, shape index: {}]   ;;  %s1838_s5 = inlined_call_operand.vmem [shape: bf16[2,8,128], index: 5, kind: output, shape index: {}]  }
   0x1   :  { %s1578_s20 = smov 0  }
   0x2 LB: > { %s27_s21 = sadd.s32 1, %s1535_s19  ;;  %p1138_p0 = scmp.ge.s32.totalorder %s1539_s20, 1  ;;  %s1539_s20 = sphi %s1578_s20, %s15_s20   ;;  %s1535_s19 = sphi %s1576_s19, %s1840_s19   ;;  %s1531_s18 = sphi %s1574_s18, %s1839_s18  }
   0x3   : > { %p29_p1 = scmp.ge.s32.totalorder %s27_s21, 2  ;;  %p220_p2 = scmp.lt.s32.totalorder %s1539_s20, 3 }
   0x5   : > { %s1842_s21 = smov (%p29_p1, %s27_s21), 0  ;;  %p221_p3 = pnand %p1138_p0, %p220_p2 }
   0x6   : > { %v1465_v0 = vld [vmem:[%s1835_s2 + $0x40] sm:$0xff] (!%p221_p3)   ;;  %v1541_v1 = vmov (!%p221_p3), 0.0   ;;  %v1467_v3 = vld [vmem:[%s1835_s2 + $0x48] sm:$0xff] (!%p221_p3)   ;;  %vm1542_vm0 = vmmov (!%p221_p3), 0   ;;  %p260_p4 = scmp.lt.s32.totalorder (!%p221_p3), %s1531_s18, 1  ;;  %v1543_v5 = vmov (!%p221_p3), 0  }
   0x7   : > { %224 = sbr.rel (%p221_p3) target bundleno = 564 (0x234), region = 40  ;;  %1318 = vmatprep.subr.bf16.mxu0 (!%p221_p3), %v1541_v1  ;;  %1338 = vmatprep.subr.bf16.mxu1 (!%p221_p3), %v1541_v1  ;;  %v1466_v2 = vld [vmem:[%s1835_s2] sm:$0xff] (!%p221_p3)   ;;  %v1468_v4 = vld [vmem:[%s1835_s2 + $0x8] sm:$0xff] (!%p221_p3)   ;;  %287 = vst [vmem:[#allocation2 + $0x4] sm:$0xc] (!%p221_p3), %v1543_v5  ;;  %v1469_v6 = vld [vmem:[%s1835_s2 + $0x50] sm:$0xff] (!%p221_p3)  }
   0x8   : > { %1319 = vmatpush3.bf16.msra.mxu0 (!%p221_p3), %v1465_v0  ;;  %1334 = vmatprep.mubr.msk.bf16.mxu0 (!%p221_p3), %vm1542_vm0, %v1541_v1  ;;  %288 = vst [vmem:[#allocation2 + $0x8] sm:$0xf] (!%p221_p3), %v1543_v5  ;;  %v1470_v7 = vld [vmem:[%s1835_s2 + $0x10] sm:$0xff] (!%p221_p3)   ;;  %v1471_v8 = vld [vmem:[%s1835_s2 + $0x58] sm:$0xff] (!%p221_p3)   ;;  %v1473_v10 = vld [vmem:[%s1835_s2 + $0x60] sm:$0xff] (!%p221_p3)   ;;  %vm554_vm2 = vcmask (!%p221_p3), 1046528  }
   0x9   : > { %1339 = vmatpush3.bf16.msra.mxu1 (!%p221_p3), %v1466_v2  ;;  %1320 = vmatprep.subr.bf16.mxu0 (!%p221_p3), %v1541_v1  ;;  %v1472_v9 = vld [vmem:[%s1835_s2 + $0x18] sm:$0xff] (!%p221_p3)   ;;  %v1474_v11 = vld [vmem:[%s1835_s2 + $0x20] sm:$0xff] (!%p221_p3)   ;;  %v1475_v14 = vld [vmem:[%s1835_s2 + $0x68] sm:$0xff] (!%p221_p3)   ;;  %vm335_vm1 = vsmask.f32 (!%p221_p3), 7424  ;;  %vm1033_vm5 = vcmask (!%p221_p3), 1045504  }
   0xa   : > { %1340 = vmatprep.subr.bf16.mxu1 (!%p221_p3), %v1541_v1  ;;  %1354 = vmatprep.mubr.msk.bf16.mxu1 (!%p221_p3), %vm1542_vm0, %v1541_v1  ;;  %v1476_v15 = vld [vmem:[%s1835_s2 + $0x28] sm:$0xff] (!%p221_p3)   ;;  %v1477_v17 = vld [vmem:[%s1835_s2 + $0x70] sm:$0xff] (!%p221_p3)   ;;  %v1479_v23 = vld [vmem:[%s1835_s2 + $0x78] sm:$0xff] (!%p221_p3)  }
   0xb   : > { %v1478_v18 = vld [vmem:[%s1835_s2 + $0x30] sm:$0xff] (!%p221_p3)   ;;  %v1480_v24 = vld [vmem:[%s1835_s2 + $0x38] sm:$0xff] (!%p221_p3)   ;;  %v1484_v29 = vld [vmem:[%s1835_s2 + $0x80] sm:$0xff] (!%p221_p3)  }
   0xc   : > { %1321 = vmatpush3.bf16.msra.mxu0 (!%p221_p3), %v1467_v3  ;;  %v1485_v33 = vld [vmem:[%s1835_s2 + $0x88] sm:$0xff] (!%p221_p3)   ;;  %v1486_v34 = vld [vmem:[%s1835_s2 + $0x90] sm:$0xff] (!%p221_p3)   ;;  %v1487_v35 = vld [vmem:[%s1835_s2 + $0x98] sm:$0xff] (!%p221_p3)  }
   0xd   : > { %1341 = vmatpush3.bf16.msra.mxu1 (!%p221_p3), %v1468_v4  ;;  %1322 = vmatprep.subr.bf16.mxu0 (!%p221_p3), %v1541_v1  ;;  %v1488_v36 = vld [vmem:[%s1835_s2 + $0xa0] sm:$0xff] (!%p221_p3)   ;;  %v1489_v37 = vld [vmem:[%s1835_s2 + $0xa8] sm:$0xff] (!%p221_p3)   ;;  %v1490_v39 = vld [vmem:[%s1835_s2 + $0xb0] sm:$0xff] (!%p221_p3)  }
   0xe   : > { %s1844_s18 = smov (!%p260_p4, %s1531_s18), 1  ;;  %1342 = vmatprep.subr.bf16.mxu1 %v1541_v1  ;;  %v1491_v41 = vld [vmem:[%s1835_s2 + $0xb8] sm:$0xff]   ;;  %v1493_v45 = vld [vmem:[%s1836_s3] sm:$0xff]   ;;  %v1494_v47 = vld [vmem:[%s1836_s3 + $0x8] sm:$0xff]  }
   0xf   : > { %s1263_s11 = sshll.u32 %s1844_s18, 3  ;;  %s1141_s12 = sshll.u32 %s1844_s18, 1  ;;  %v1657_v16 = vld [vmem:[#allocation2 + $0x8] ss:$0 sps:$4 sm:$0x11]   ;;  %v1495_v46 = vld [vmem:[%s1836_s3 + $0x40] sm:$0xff]  }
  0x10   : > { %1323 = vmatpush3.bf16.msra.mxu0 %v1469_v6  ;;  %s267_s17 = scalar_lea.vmem %s1833_s0, %s1263_s11  ;;  %s274_s24 = scalar_lea.vmem %s1834_s1, %s1141_s12  ;;  %v344_v22 = vshll.u32 %v1657_v16, 16  ;;  %v556_v43 = vrot.slane %v1657_v16, 1  ;;  %v1497_v48 = vld [vmem:[%s1836_s3 + $0x48] sm:$0xff]   ;;  %v1496_v49 = vld [vmem:[%s1836_s3 + $0x10] sm:$0xff]   ;;  %v1498_v50 = vld [vmem:[%s1836_s3 + $0x18] sm:$0xff]  }
  0x11   : > { %1343 = vmatpush3.bf16.msra.mxu1 %v1470_v7  ;;  %1324 = vmatprep.subr.bf16.mxu0 %v1541_v1  ;;  %v283_v12 = vld [vmem:[%s267_s17] sm:$0xf]  ;;  %v1499_v51 = vld [vmem:[%s1836_s3 + $0x50] sm:$0xff]   ;;  %v1501_v53 = vld [vmem:[%s1836_s3 + $0x58] sm:$0xff]   ;;  %s1142_s25 = sshll.u32 %s1844_s18, 2 }
  0x12   : > { %1344 = vmatprep.subr.bf16.mxu1 %v1541_v1  ;;  %v285_v13 = vld [vmem:[%s274_s24] sm:$0x3]  ;;  %284 = vst [vmem:[#allocation2] sm:$0xf] %v283_v12  ;;  %v346_v28 = vrot.slane %v344_v22, 1  ;;  %v1502_v54 = vld [vmem:[%s1836_s3 + $0x28] sm:$0xff]   ;;  %s281_s28 = scalar_lea.vmem %s1838_s5, %s1142_s25 }
  0x13   : > { %286 = vst [vmem:[#allocation2 + $0x4] sm:$0x3] %v285_v13  ;;  %v1500_v52 = vld [vmem:[%s1836_s3 + $0x20] sm:$0xff]   ;;  %v1504_v56 = vld [vmem:[%s1836_s3 + $0x30] sm:$0xff]   ;;  %v1505_v57 = vld [vmem:[%s1836_s3 + $0x68] sm:$0xff]  }
  0x14   : > { %1325 = vmatpush3.bf16.msra.mxu0 %v1471_v8  ;;  %v1503_v55 = vld [vmem:[%s1836_s3 + $0x60] sm:$0xff]   ;;  %v1506_v58 = vld [vmem:[%s1836_s3 + $0x38] sm:$0xff]   ;;  %v1507_v59 = vld [vmem:[%s1836_s3 + $0x70] sm:$0xff]   ;;  %v671_v8 = vlaneseq }
  0x15   : > { %1345 = vmatpush3.bf16.msra.mxu1 %v1472_v9  ;;  %1326 = vmatprep.subr.bf16.mxu0 %v1541_v1  ;;  %v1508_v60 = vld [vmem:[%s1836_s3 + $0x78] sm:$0xff]   ;;  %v1203_v12 = vld [vmem:[%s1837_s4] ss:$0 sm:$0xff] }
  0x16   : > { %1346 = vmatprep.subr.bf16.mxu1 %v1541_v1  ;;  %v672_v9 = vshrl.u32 %v671_v8, 7 }
  0x18   : > { %1327 = vmatpush3.bf16.msra.mxu0 %v1473_v10  ;;  %v673_v10 = vadd.s32 8, %v672_v9 }
  0x19   : > { %1347 = vmatpush3.bf16.msra.mxu1 %v1474_v11  ;;  %1328 = vmatprep.subr.bf16.mxu0 %v1541_v1  ;;  %v307_v19 = vld [vmem:[#allocation2] sm:$0xf] }
  0x1a   : > { %1348 = vmatprep.subr.bf16.mxu1 %v1541_v1  ;;  %v308_v20 = vld [vmem:[#allocation2 + $0x4] sm:$0xf]  ;;  %v533_v38 = vld [vmem:[#allocation2] sm:$0xe] }
  0x1b   : > { %v1159_v21 = vcombine.low %v307_v19, %v308_v20  ;;  %v1483_v30 = vld [vmem:[#allocation2] sm:$0xff]   ;;  %v1194_v40 = vcombine.low %v533_v38, %v308_v20  ;;  %v1514_v38 = vld [vmem:[%s1836_s3 + $0xa8] sm:$0xff]  }
  0x1c   : > { %1329 = vmatpush3.bf16.msra.mxu0 %v1475_v14 }
  0x1d   : > { %1349 = vmatpush3.bf16.msra.mxu1 %v1476_v15  ;;  %1330 = vmatprep.subr.bf16.mxu0 %v1541_v1  ;;  %v337_v25 = vshrl.u32 %v1159_v21, 16  ;;  %v339_v26 = vshll.u32 %v1159_v21, 16  ;;  %v555_v42 = vrot.slane %v1194_v40, 1  ;;  %v676_v15 = vadd.s32 4294967295, %v672_v9  ;;  %v1516_v40 = vld [vmem:[%s1836_s3 + $0xb8] sm:$0xff]  }
  0x1e   : > { %1350 = vmatprep.subr.bf16.mxu1 %v1541_v1 }
  0x1f   : > { %v341_v27 = vrot.slane %v339_v26, 1  ;;  %v557_v44 = vsel %vm554_vm2, %v555_v42, %v556_v43  ;;  %vm678_vm3 = vcmp.ge.s32.totalorder %v676_v15, 0 }
  0x20   : > { %1331 = vmatpush3.bf16.msra.mxu0 %v1477_v17  ;;  %v677_v17 = vadd.s32 4294967295, %v673_v10 }
  0x21   : > { %1351 = vmatpush3.bf16.msra.mxu1 %v1478_v18  ;;  %1332 = vmatprep.subr.bf16.mxu0 %v1541_v1  ;;  %v342_v31 = vor.u32 %v341_v27, %v337_v25 }
  0x22   : > { %1352 = vmatprep.subr.bf16.mxu1 %v1541_v1  ;;  %vm681_vm4 = vcmp.lt.s32.totalorder %v677_v17, 8 }
  0x23   : > { %v347_v32 = vsel %vm335_vm1, %v342_v31, %v346_v28 }
  0x24   : > { %1333 = vmatpush3.bf16.msra.mxu0 %v1479_v23 }
  0x25   : > { %1353 = vmatpush3.bf16.msra.mxu1 %v1480_v24  ;;  %1358 = vmatprep.subr.bf16.mxu0 %v1541_v1 }
  0x26   : > { %1378 = vmatprep.subr.bf16.mxu1 %v1541_v1 }
  0x27   : > { %1335 = vmatmul.mubr.bf16.vlgmr.msra.gmra.mrb[0].mxu0 %v347_v32  ;;  %v1509_v32 = vld [vmem:[%s1836_s3 + $0x80] sm:$0xff]  }
  0x28   : > { %1355 = vmatmul.mubr.bf16.vlgmr.msra.gmra.mrb[0].mxu1 %v1483_v30  ;;  %1359 = vmatpush3.bf16.msra.mxu0 %v1484_v29 }
  0x29   : > { %1374 = vmatprep.mubr.msk.bf16.mxu0 %vm1542_vm0, %v1541_v1  ;;  %1360 = vmatprep.subr.bf16.mxu0 %v1541_v1 }
  0x2a   : > { %1394 = vmatprep.mubr.msk.bf16.mxu1 %vm1542_vm0, %v1541_v1  ;;  %1379 = vmatpush3.bf16.msra.mxu1 %v1495_v46 }
  0x2b   : > { %1380 = vmatprep.subr.bf16.mxu1 %v1541_v1 }
  0x2c   : > { %1361 = vmatpush3.bf16.msra.mxu0 %v1485_v33 }
  0x2d   : > { %1362 = vmatprep.subr.bf16.mxu0 %v1541_v1 }
  0x2e   : > { %1381 = vmatpush3.bf16.msra.mxu1 %v1497_v48 }
  0x2f   : > { %1382 = vmatprep.subr.bf16.mxu1 %v1541_v1 }
  0x30   : > { %1363 = vmatpush3.bf16.msra.mxu0 %v1486_v34  ;;  %v1510_v34 = vld [vmem:[%s1836_s3 + $0x88] sm:$0xff]  }
  0x31   : > { %1364 = vmatprep.subr.bf16.mxu0 %v1541_v1 }
  0x32   : > { %1383 = vmatpush3.bf16.msra.mxu1 %v1499_v51 }
  0x33   : > { %1384 = vmatprep.subr.bf16.mxu1 %v1541_v1 }
  0x34   : > { %1365 = vmatpush3.bf16.msra.mxu0 %v1487_v35  ;;  %v1511_v35 = vld [vmem:[%s1836_s3 + $0x90] sm:$0xff]  }
  0x35   : > { %1366 = vmatprep.subr.bf16.mxu0 %v1541_v1 }
  0x36   : > { %1385 = vmatpush3.bf16.msra.mxu1 %v1501_v53  ;;  %v1022_v53 = vld [vmem:[#allocation2 + $0x4] sm:$0x1] }
  0x37   : > { %1386 = vmatprep.subr.bf16.mxu1 %v1541_v1 }
  0x38   : > { %1367 = vmatpush3.bf16.msra.mxu0 %v1488_v36  ;;  %v1512_v36 = vld [vmem:[%s1836_s3 + $0x98] sm:$0xff]  }
  0x39   : > { %1368 = vmatprep.subr.bf16.mxu0 %v1541_v1 }
  0x3a   : > { %1387 = vmatpush3.bf16.msra.mxu1 %v1503_v55  ;;  %v1024_v55 = vunpack.c.l.bf16 %v1022_v53 }
  0x3b   : > { %1388 = vmatprep.subr.bf16.mxu1 %v1541_v1 }
  0x3c   : > { %1369 = vmatpush3.bf16.msra.mxu0 %v1489_v37  ;;  %v1513_v37 = vld [vmem:[%s1836_s3 + $0xa0] sm:$0xff]  }
  0x3d   : > { %1370 = vmatprep.subr.bf16.mxu0 %v1541_v1 }
  0x3e   : > { %1389 = vmatpush3.bf16.msra.mxu1 %v1505_v57 }
  0x3f   : > { %1390 = vmatprep.subr.bf16.mxu1 %v1541_v1 }
  0x40   : > { %1371 = vmatpush3.bf16.msra.mxu0 %v1490_v39  ;;  %v1515_v39 = vld [vmem:[%s1836_s3 + $0xb0] sm:$0xff]  }
  0x41   : > { %1372 = vmatprep.subr.bf16.mxu0 %v1541_v1 }
  0x42   : > { %1391 = vmatpush3.bf16.msra.mxu1 %v1507_v59 }
  0x43   : > { %1392 = vmatprep.subr.bf16.mxu1 %v1541_v1 }
  0x44   : > { %1373 = vmatpush3.bf16.msra.mxu0 %v1491_v41 }
  0x45   : > { %1398 = vmatprep.subr.bf16.mxu0 %v1541_v1 }
  0x46   : > { %1393 = vmatpush3.bf16.msra.mxu1 %v1508_v60 }
  0x47   : > { %1375 = vmatmul.mubr.bf16.vlgmr.msra.gmra.mrb[4].mxu0 %v557_v44  ;;  %1418 = vmatprep.subr.bf16.mxu1 %v1541_v1 }
  0x48   : > { %1414 = vmatprep.mubr.msk.bf16.mxu0 %vm1542_vm0, %v1541_v1  ;;  %1399 = vmatpush3.bf16.msra.mxu0 %v1493_v45 }
  0x49   : > { %1400 = vmatprep.subr.bf16.mxu0 %v1541_v1 }
  0x4c   : > { %1401 = vmatpush3.bf16.msra.mxu0 %v1494_v47 }
  0x4d   : > { %1402 = vmatprep.subr.bf16.mxu0 %v1541_v1 }
  0x50   : > { %1403 = vmatpush3.bf16.msra.mxu0 %v1496_v49 }
  0x51   : > { %1404 = vmatprep.subr.bf16.mxu0 %v1541_v1 }
  0x54   : > { %1405 = vmatpush3.bf16.msra.mxu0 %v1498_v50 }
  0x55   : > { %1406 = vmatprep.subr.bf16.mxu0 %v1541_v1 }
  0x58   : > { %1407 = vmatpush3.bf16.msra.mxu0 %v1500_v52  ;;  %v1021_v52 = vld [vmem:[#allocation2] sm:$0xe] }
  0x59   : > { %1408 = vmatprep.subr.bf16.mxu0 %v1541_v1 }
  0x5c   : > { %1409 = vmatpush3.bf16.msra.mxu0 %v1502_v54  ;;  %v1023_v54 = vunpack.c.l.bf16 %v1021_v52 }
  0x5d   : > { %1410 = vmatprep.subr.bf16.mxu0 %v1541_v1 }
  0x60   : > { %1411 = vmatpush3.bf16.msra.mxu0 %v1504_v56  ;;  %v1034_v56 = vrot.slane %v1023_v54, 2 }
  0x61   : > { %1412 = vmatprep.subr.bf16.mxu0 %v1541_v1 }
  0x64   : > { %1413 = vmatpush3.bf16.msra.mxu0 %v1506_v58  ;;  %v1260_v58 = vld [vmem:[%s1837_s4 + $0x1] ss:$0 sm:$0xff] }
  0xfa   : > { %v431_v61 = vpop.f32.mrb[0].mxu0 }
  0xfb   : > { %v526_v62 = vpop.f32.mrb[0].mxu1  ;;  %v1336_v0 = vpop.f32.mrb[1].mxu0 }
  0xfc   : > { %v527_v63 = vadd.f32 %v526_v62, %v431_v61  ;;  %v1356_v2 = vpop.f32.mrb[1].mxu1  ;;  %v434_v3 = vpop.f32.mrb[2].mxu0 }
  0xfd   : > { %v529_v4 = vpop.f32.mrb[2].mxu1  ;;  %v1337_v6 = vpop.f32.mrb[3].mxu0 }
  0xfe   : > { %v530_v5 = vadd.f32 %v529_v4, %v434_v3  ;;  %v1357_v7 = vpop.f32.mrb[3].mxu1 }
 0x11a   : > { %v641_v11 = vpop.f32.mrb[4].mxu0 }
 0x11b   : > { %v648_v13 = vadd.f32 %v641_v11, %v527_v63  ;;  %v1376_v14 = vpop.f32.mrb[5].mxu0 }
 0x11c   : > { %v644_v16 = vpop.f32.mrb[6].mxu0 }
 0x11d   : > { %v655_v18 = vadd.f32 %v1203_v12, %v648_v13  ;;  %v649_v19 = vadd.f32 %v644_v16, %v530_v5  ;;  %v1377_v20 = vpop.f32.mrb[7].mxu0 }
 0x11f   : > { %v657_v21 = vmax.f32 %v655_v18, 0.0  ;;  %v656_v22 = vadd.f32 %v1203_v12, %v649_v19 }
 0x121   : > { %v658_v23 = vmax.f32 %v656_v22, 0.0  ;;  %v688_v24 = vsel %vm678_vm3, %v657_v21, 0.0 }
 0x123   : > { %v689_v25 = vsel %vm681_vm4, %v658_v23, 0.0 }
 0x124   : > { %v690_v26 = vpack.c.bf16 %v689_v25, %v688_v24 }
 0x126   : > { %691 = vst [vmem:[#allocation3] sm:$0xff] %v690_v26 }
 0x12d   : > { %v692_v27 = vld [vmem:[#allocation3] sm:$0xf] }
 0x12e   : > { %v709_v28 = vld [vmem:[#allocation3] sm:$0x1f]  ;;  %1415 = vmatmul.mubr.bf16.vlgmr.msra.gmra.mrb[8].mxu0 %v692_v27 }
 0x12f   : > { %v730_v29 = vshll.u32 %v709_v28, 16  ;;  %v728_v30 = vshrl.u32 %v709_v28, 16  ;;  %v911_v41 = vld [vmem:[#allocation3] sm:$0x1e] }
 0x130   : > { %v930_v42 = vrot.slane %v911_v41, 1 }
 0x131   : > { %v732_v31 = vrot.slane %v730_v29, 1 }
 0x133   : > { %v733_v33 = vor.u32 %v732_v31, %v728_v30 }
 0x135   : > { %1395 = vmatmul.mubr.bf16.vlgmr.msra.gmra.mrb[4].mxu1 %v733_v33 }
 0x136   : > { %1419 = vmatpush3.bf16.msra.mxu1 %v1509_v32  ;;  %1434 = vmatprep.mubr.msk.bf16.mxu1 %vm1542_vm0, %v1541_v1 }
 0x137   : > { %1420 = vmatprep.subr.bf16.mxu1 %v1541_v1 }
 0x13a   : > { %1421 = vmatpush3.bf16.msra.mxu1 %v1510_v34 }
 0x13b   : > { %1422 = vmatprep.subr.bf16.mxu1 %v1541_v1 }
 0x13e   : > { %1423 = vmatpush3.bf16.msra.mxu1 %v1511_v35 }
 0x13f   : > { %1424 = vmatprep.subr.bf16.mxu1 %v1541_v1 }
 0x142   : > { %1425 = vmatpush3.bf16.msra.mxu1 %v1512_v36 }
 0x143   : > { %1426 = vmatprep.subr.bf16.mxu1 %v1541_v1 }
 0x146   : > { %1427 = vmatpush3.bf16.msra.mxu1 %v1513_v37 }
 0x147   : > { %1428 = vmatprep.subr.bf16.mxu1 %v1541_v1 }
 0x14a   : > { %1429 = vmatpush3.bf16.msra.mxu1 %v1514_v38 }
 0x14b   : > { %1430 = vmatprep.subr.bf16.mxu1 %v1541_v1 }
 0x14e   : > { %1431 = vmatpush3.bf16.msra.mxu1 %v1515_v39 }
 0x14f   : > { %1432 = vmatprep.subr.bf16.mxu1 %v1541_v1  ;;  %v1035_v1 = vrot.slane %v1024_v55, 2 }
 0x151   : > { %v1036_v61 = vsel %vm1033_vm5, %v1034_v56, %v1035_v1 }
 0x152   : > { %1433 = vmatpush3.bf16.msra.mxu1 %v1516_v40 }
 0x155   : > { %1435 = vmatmul.mubr.bf16.vlgmr.msra.gmra.mrb[8].mxu1 %v930_v42 }
 0x201   : > { %v905_v43 = vpop.f32.mrb[8].mxu0 }
 0x202   : > { %v1416_v44 = vpop.f32.mrb[9].mxu0 }
 0x203   : > { %v908_v45 = vpop.f32.mrb[10].mxu0 }
 0x204   : > { %v1417_v46 = vpop.f32.mrb[11].mxu0 }
 0x208   : > { %v817_v47 = vpop.f32.mrb[4].mxu1 }
 0x209   : > { %v906_v48 = vadd.f32 %v905_v43, %v817_v47  ;;  %v1396_v49 = vpop.f32.mrb[5].mxu1 }
 0x20a   : > { %v820_v50 = vpop.f32.mrb[6].mxu1 }
 0x20b   : > { %v1397_v51 = vpop.f32.mrb[7].mxu1 }
 0x228   : > { %v1014_v57 = vpop.f32.mrb[8].mxu1 }
 0x229   : > { %v1020_v59 = vadd.f32 %v1014_v57, %v906_v48  ;;  %v1436_v60 = vpop.f32.mrb[9].mxu1 }
 0x22a   : > { %v1017_v62 = vpop.f32.mrb[10].mxu1 }
 0x22b   : > { %v1030_v63 = vadd.f32 %v1260_v58, %v1020_v59  ;;  %v1437_v0 = vpop.f32.mrb[11].mxu1 }
 0x22d   : > { %v1038_v2 = vadd.f32 %v1036_v61, %v1030_v63 }
 0x22f   : > { %v1039_v3 = vmax.f32 %v1038_v2, 0.0 }
 0x231   : > { %v1040_v4 = vpack.c.bf16 %v1039_v3, %v1039_v3 }
 0x233   : > { %1041 = vst [vmem:[%s281_s28] sm:$0xf] %v1040_v4 }
 0x234 PF: > { %s15_s20 = sadd.s32 1, %s1539_s20   ;;  %s1839_s18 = smov %s1535_s19 }
 0x235   : > { %p12_p5 = scmp.ge.s32.totalorder %s15_s20, 4   ;;  %s1840_s19 = smov %s1842_s21 }
 0x237   :  { %14 = sbr.rel (!%p12_p5) target bundleno = 2 (0x2), region = 81 }

// kernel: resnet_stage_forward_pallas.2
= control target key start
LH: loop header
LB: loop body
LE: loop exit
PB: predicated region body
PF: predicated region fallthrough
CT: control target
= control target key end

     0   :  { %11 = vsyncpa [#allocation5], 0  ;;  %s2300_s0 = inlined_call_operand.vmem [shape: bf16[2,16,256], index: 0, kind: input, shape index: {}]   ;;  %s2301_s1 = inlined_call_operand.vmem [shape: bf16[2,1,3,256], index: 1, kind: input, shape index: {}]   ;;  %s2302_s2 = inlined_call_operand.vmem [shape: bf16[2,256,128], index: 2, kind: input, shape index: {}]   ;;  %s2303_s3 = inlined_call_operand.hbm [shape: bf16[3,128,128], index: 3, kind: input, shape index: {}]   ;;  %s2304_s4 = inlined_call_operand.hbm [shape: bf16[256,128], index: 4, kind: input, shape index: {}]   ;;  %s2305_s5 = inlined_call_operand.vmem [shape: f32[8,128], index: 5, kind: input, shape index: {}]   ;;  %s2306_s6 = inlined_call_operand.vmem [shape: bf16[2,8,128], index: 6, kind: output, shape index: {}]  }
   0x1   :  { %12 = vsyncpa [#allocation7], 0  ;;  %s2012_s21 = smov 0   ;;  %s2014_s22 = smov 0  }
   0x2   :  { %s2016_s23 = smov 0  }
   0x3 LB: > { %s1468_s24 = sadd.s32 4294967295, %s1968_s23   ;;  %s30_s25 = sadd.s32 1, %s1964_s22  ;;  %s1968_s23 = sphi %s2016_s23, %s18_s23   ;;  %s1964_s22 = sphi %s2014_s22, %s2322_s22   ;;  %s1960_s21 = sphi %s2012_s21, %s2321_s21  }
   0x4   : > { %p32_p0 = scmp.ge.s32.totalorder %s30_s25, 2  ;;  %p1470_p1 = scmp.ge.s32.totalorder %s1968_s23, 1 }
   0x5   : > { %p203_p2 = scmp.lt.s32.totalorder %s1968_s23, 3  ;;  %p2037_p4 = scmp.eq.s32.totalorder %s1468_s24, 0 }
   0x6   : > { %s2324_s25 = smov (%p32_p0, %s30_s25), 0  ;;  %s1970_s28 = smov [#allocation4]  }
   0x7   : > { %p2033_p3 = pnand %p1470_p1, %p203_p2  ;;  %s218_s29 = sshll.u32 %s1970_s28, 4  ;;  %s219_s29 = int_to_ptr.vmem [resolvable:$true] %s218_s29 }
   0x8   : > { %s2311_s27 = scalar_select %p2037_p4, 1, 0 }
   0x9   : > { %s2310_s26 = scalar_select %p2033_p3, 1, 0 }
   0xa   : > { %p1763_p5 = pneg %p2033_p3  ;;  %s1971_s7 = smov [#allocation6]  }
   0xb   : > { %s231_s8 = sshll.u32 %s1971_s7, 4  ;;  %s1882_s11 = scalar_lea.hbm %s2303_s3, 3072  ;;  %s2049_s8 = int_to_ptr.vmem [resolvable:$true] %s231_s8 }
   0xc   : > { %p2045_p6 = pnand %p2037_p4, %p1763_p5  ;;  %p1883_p7 = scmp.ne.s32.totalorder %s2303_s3, %s1882_s11 }
   0xd   : > { %p1889_p11 = scmp.lt.u32.totalorder %s1882_s11, %s2303_s3 }
   0xe   : > { %p1884_p8 = pneg %p2045_p6 }
  0x10   : > { %p1885_p9 = pnand %p1884_p8, %p1883_p7 }
  0x12   : > { %p1886_p10 = pneg %p1885_p9 }
  0x14   : > { %p1891_p12 = pnand %p1889_p11, %p1886_p10 }
  0x16   : > { %1894 = shalt.err (!%p1891_p12)
}
  0x17   : > { %s1895_s16 = scalar_lea.vmem %s219_s29, 3072  ;;  %p1903_p2 = scmp.lt.s32.totalorder %s219_s29, %s219_s29 }
  0x18   : > { %p1896_p13 = scmp.ne.s32.totalorder %s219_s29, %s1895_s16  ;;  %p1904_p5 = scmp.lt.s32.totalorder %s1895_s16, %s1895_s16 }
  0x1a   : > { %p1898_p0 = pnand %p1896_p13, %p1884_p8  ;;  %p1905_p4 = por %p1904_p5, %p1903_p2 }
  0x1c   : > { %p1899_p1 = pneg %p1898_p0 }
  0x1e   : > { %p1906_p3 = pnand %p1905_p4, %p1899_p1 }
  0x20   : > { %1909 = shalt.err (!%p1906_p3)
}
  0x21   : > { %s1972_s17 = smov 64   ;;  %s1973_s18 = smov 4  }
  0x22   : > { %1766 = dma.hbm_to_vmem [thread:$0]  (!%p2045_p6), %s2303_s3, 3072, %s219_s29, [#allocation5], %s1972_s17, %s1972_s17, %s1973_s18  }
  0x23   : > { %s1910_s7 = scalar_lea.hbm %s2304_s4, 2048 }
  0x24   : > { %p1911_p7 = scmp.ne.s32.totalorder %s2304_s4, %s1910_s7  ;;  %p1917_p9 = scmp.lt.u32.totalorder %s1910_s7, %s2304_s4 }
  0x26   : > { %p1913_p3 = pnand %p1911_p7, %p1884_p8 }
  0x28   : > { %p1914_p4 = pneg %p1913_p3 }
  0x2a   : > { %p1919_p10 = pnand %p1917_p9, %p1914_p4 }
  0x2c   : > { %1922 = shalt.err (!%p1919_p10)
}
  0x2d   : > { %s1923_s29 = scalar_lea.vmem %s2049_s8, 2048  ;;  %p1931_p0 = scmp.lt.s32.totalorder %s2049_s8, %s2049_s8 }
  0x2e   : > { %p1924_p11 = scmp.ne.s32.totalorder %s2049_s8, %s1923_s29  ;;  %p1932_p1 = scmp.lt.s32.totalorder %s1923_s29, %s1923_s29 }
  0x30   : > { %p1926_p12 = pnand %p1924_p11, %p1884_p8  ;;  %p1933_p2 = por %p1932_p1, %p1931_p0 }
  0x32   : > { %p1927_p13 = pneg %p1926_p12 }
  0x34   : > { %p1934_p5 = pnand %p1933_p2, %p1927_p13 }
  0x36   : > { %1937 = shalt.err (!%p1934_p5)
}
  0x37   : > { %1769 = dma.hbm_to_vmem [thread:$0]  (!%p2045_p6), %s2304_s4, 2048, %s2049_s8, [#allocation7], %s1972_s17, %s1972_s17, %s1973_s18  }
  0x38   : > { %p2313_p7 = scmp.ne.s32.totalorder %s2310_s26, 0 }
  0x39   : > { %p2314_p3 = scmp.ne.s32.totalorder (!%p2313_p7), %s2311_s27, 0 }
  0x3a   : > { %274 = sbr.rel (%p2313_p7) target bundleno = 606 (0x25e), region = 44 }
  0x41   : > { %1951 = dma.done.wait (%p2314_p3), [#allocation5], 3072  }
  0x42   : > { %1953 = vsyncadd (%p2314_p3), [#allocation5], 4294964224 }
  0x43   : > { %1955 = dma.done.wait (%p2314_p3), [#allocation7], 2048  }
  0x44   : > { %1957 = vsyncadd (%p2314_p3), [#allocation7], 4294965248  ;;  %v1974_v0 = vmov 0   ;;  %v1805_v1 = vld [vmem:[%s2302_s2 + $0xc0] sm:$0xff]   ;;  %vm362_vm0 = vsmask.f32 1280 }
  0x45   : > { %381 = vst [vmem:[#allocation2 + $0x10] sm:$0xff] %v1974_v0  ;;  %v1806_v2 = vld [vmem:[%s2302_s2 + $0x40] sm:$0xff]   ;;  %vm365_vm1 = vsmask.f32 5376  ;;  %1602 = vmatprep.subr.bf16.mxu0 %v1805_v1  ;;  %v1809_v5 = vld [vmem:[%s2302_s2 + $0xc8] sm:$0xff]   ;;  %v1813_v9 = vld [vmem:[%s2302_s2 + $0xd0] sm:$0xff]  }
  0x46   : > { %v1807_v3 = vld [vmem:[%s2302_s2 + $0x80] sm:$0xff]   ;;  %1624 = vmatprep.subr.bf16.mxu1 %v1806_v2  ;;  %v1810_v6 = vld [vmem:[%s2302_s2 + $0x48] sm:$0xff]   ;;  %vm361_vm2 = vcmask 1041408   ;;  %v1814_v10 = vld [vmem:[%s2302_s2 + $0x50] sm:$0xff]   ;;  %vm364_vm3 = vcmask 1045508   ;;  %p323_p6 = scmp.lt.s32.totalorder %s1960_s21, 1 }
  0x47   : > { %v1808_v4 = vld [vmem:[%s2302_s2] sm:$0xff]   ;;  %1603 = vmatpush3.bf16.msra.mxu0 %v1807_v3  ;;  %v1811_v7 = vld [vmem:[%s2302_s2 + $0x88] sm:$0xff]   ;;  %v1815_v11 = vld [vmem:[%s2302_s2 + $0x90] sm:$0xff]   ;;  %vm372_vm6 = vsmask.f32 7942  ;;  %vm371_vm9 = vcmask 1043457  }
  0x48   : > { %1625 = vmatpush3.bf16.msra.mxu1 %v1808_v4  ;;  %1604 = vmatprep.subr.bf16.mxu0 %v1809_v5  ;;  %v1812_v8 = vld [vmem:[%s2302_s2 + $0x8] sm:$0xff]   ;;  %v1816_v12 = vld [vmem:[%s2302_s2 + $0x10] sm:$0xff]   ;;  %v1817_v13 = vld [vmem:[%s2302_s2 + $0xd8] sm:$0xff]   ;;  %s2326_s21 = smov (!%p323_p6, %s1960_s21), 1  ;;  %vm375_vm8 = vsmask.f32 7958 }
  0x49   : > { %1626 = vmatprep.subr.bf16.mxu1 %v1810_v6  ;;  %vm2148_vm4 = vmand %vm361_vm2, %vm362_vm0  ;;  %v1818_v16 = vld [vmem:[%s2302_s2 + $0x58] sm:$0xff]   ;;  %v1821_v19 = vld [vmem:[%s2302_s2 + $0xe0] sm:$0xff]   ;;  %s1600_s7 = sshll.u32 %s2326_s21, 4  ;;  %s1601_s11 = sshll.u32 %s2326_s21, 2  ;;  %vm374_vm11 = vcmask 1047557   ;;  %v1975_v40 = vmov 0.0  }
  0x4a   : > { %vm2153_vm5 = vmand %vm364_vm3, %vm365_vm1  ;;  %v1819_v17 = vld [vmem:[%s2302_s2 + $0x98] sm:$0xff]   ;;  %v1822_v20 = vld [vmem:[%s2302_s2 + $0x60] sm:$0xff]   ;;  %s331_s16 = scalar_lea.vmem %s2300_s0, %s1600_s7  ;;  %s340_s18 = scalar_lea.vmem %s2301_s1, %s1601_s11  ;;  %vm465_vm14 = vsmask.f32 7424  ;;  %vm1976_vm15 = vmmov 0  }
  0x4b   : > { %1605 = vmatpush3.bf16.msra.mxu0 %v1811_v7  ;;  %v1820_v18 = vld [vmem:[%s2302_s2 + $0x18] sm:$0xff]   ;;  %v1823_v21 = vld [vmem:[%s2302_s2 + $0xa0] sm:$0xff]   ;;  %v1825_v23 = vld [vmem:[%s2302_s2 + $0xe8] sm:$0xff]   ;;  %s347_s15 = scalar_lea.vmem %s2306_s6, %s1601_s11 }
  0x4c   : > { %1627 = vmatpush3.bf16.msra.mxu1 %v1812_v8  ;;  %1606 = vmatprep.subr.bf16.mxu0 %v1813_v9  ;;  %v1824_v22 = vld [vmem:[%s2302_s2 + $0x20] sm:$0xff]   ;;  %v1826_v24 = vld [vmem:[%s2302_s2 + $0x68] sm:$0xff]   ;;  %vm367_vm7 = vmor %vm2153_vm5, %vm2148_vm4 }
  0x4d   : > { %1628 = vmatprep.subr.bf16.mxu1 %v1814_v10  ;;  %v1827_v25 = vld [vmem:[%s2302_s2 + $0xa8] sm:$0xff]   ;;  %v1829_v27 = vld [vmem:[%s2302_s2 + $0xf0] sm:$0xff]   ;;  %v1833_v31 = vld [vmem:[%s2302_s2 + $0xf8] sm:$0xff]  }
  0x4e   : > { %v1828_v26 = vld [vmem:[%s2302_s2 + $0x28] sm:$0xff]   ;;  %v1830_v28 = vld [vmem:[%s2302_s2 + $0x70] sm:$0xff]   ;;  %v1834_v32 = vld [vmem:[%s2302_s2 + $0x78] sm:$0xff]  }
  0x4f   : > { %1607 = vmatpush3.bf16.msra.mxu0 %v1815_v11  ;;  %v1831_v29 = vld [vmem:[%s2302_s2 + $0xb0] sm:$0xff]   ;;  %v1835_v33 = vld [vmem:[%s2302_s2 + $0xb8] sm:$0xff]   ;;  %v349_v35 = vld [vmem:[%s331_s16] sm:$0xff] }
  0x50   : > { %1629 = vmatpush3.bf16.msra.mxu1 %v1816_v12  ;;  %1608 = vmatprep.subr.bf16.mxu0 %v1817_v13  ;;  %v1832_v30 = vld [vmem:[%s2302_s2 + $0x30] sm:$0xff]   ;;  %v1836_v34 = vld [vmem:[%s2302_s2 + $0x38] sm:$0xff]   ;;  %v1482_v36 = vld.sshfl [vmem:[%s340_s18] sm:$0x33 pattern:$0x76325410] }
  0x51   : > { %1630 = vmatprep.subr.bf16.mxu1 %v1818_v16  ;;  %vm2233_vm10 = vmand %vm371_vm9, %vm372_vm6  ;;  %350 = vst [vmem:[#allocation2] sm:$0xff] %v349_v35  ;;  %v368_v38 = vld [vmem:[#allocation2 + $0x8] sm:$0x33]  ;;  %v418_v39 = vld [vmem:[#allocation2 + $0x10] sm:$0x11] }
  0x52   : > { %v369_v41 = vsel %vm367_vm7, %v1482_v36, %v368_v38  ;;  %v1518_v42 = vcombine.high %v418_v39, %v418_v39  ;;  %v1517_v43 = vcombine.low %v418_v39, %v418_v39  ;;  %vm376_vm12 = vmand %vm374_vm11, %vm375_vm8  ;;  %v1839_v49 = vld [vmem:[#allocation4] sm:$0xff]   ;;  %v1840_v58 = vld [vmem:[#allocation4 + $0x8] sm:$0xff]  }
  0x53   : > { %1609 = vmatpush3.bf16.msra.mxu0 %v1819_v17  ;;  %370 = vst [vmem:[#allocation2 + $0x8] sm:$0x33] %v369_v41  ;;  %vm377_vm13 = vmor %vm376_vm12, %vm2233_vm10  ;;  %v1841_v61 = vld [vmem:[#allocation4 + $0x40] sm:$0xff]   ;;  %v1842_v2 = vld [vmem:[#allocation4 + $0x10] sm:$0xff]   ;;  %v797_v17 = vlaneseq }
  0x54   : > { %1631 = vmatpush3.bf16.msra.mxu1 %v1820_v18  ;;  %1610 = vmatprep.subr.bf16.mxu0 %v1821_v19  ;;  %v486_v44 = vshll.u32 %v1518_v42, 16  ;;  %v474_v45 = vshll.u32 %v1517_v43, 16  ;;  %v1843_v3 = vld [vmem:[#allocation4 + $0x48] sm:$0xff]   ;;  %v1844_v4 = vld [vmem:[#allocation4 + $0x18] sm:$0xff]   ;;  %v1845_v5 = vld [vmem:[#allocation4 + $0x50] sm:$0xff]  }
  0x55   : > { %1632 = vmatprep.subr.bf16.mxu1 %v1822_v20  ;;  %v1846_v6 = vld [vmem:[#allocation4 + $0x20] sm:$0xff]   ;;  %v1847_v7 = vld [vmem:[#allocation4 + $0x58] sm:$0xff]   ;;  %v1848_v8 = vld [vmem:[#allocation4 + $0x28] sm:$0xff]  }
  0x56   : > { %v488_v48 = vrot.slane %v486_v44, 1  ;;  %v476_v51 = vrot.slane %v474_v45, 1  ;;  %v1849_v9 = vld [vmem:[#allocation4 + $0x60] sm:$0xff]   ;;  %v1850_v10 = vld [vmem:[#allocation4 + $0x30] sm:$0xff]   ;;  %v1851_v11 = vld [vmem:[#allocation4 + $0x68] sm:$0xff]  }
  0x57   : > { %1611 = vmatpush3.bf16.msra.mxu0 %v1823_v21  ;;  %v1852_v12 = vld [vmem:[#allocation4 + $0x38] sm:$0xff]   ;;  %v1853_v13 = vld [vmem:[#allocation4 + $0x70] sm:$0xff]   ;;  %v1854_v14 = vld [vmem:[#allocation6 + $0x40] sm:$0xff]  }
  0x58   : > { %1633 = vmatpush3.bf16.msra.mxu1 %v1824_v22  ;;  %1612 = vmatprep.subr.bf16.mxu0 %v1825_v23  ;;  %v1855_v15 = vld [vmem:[#allocation4 + $0x78] sm:$0xff]   ;;  %v798_v22 = vshrl.u32 %v797_v17, 7  ;;  %v1856_v45 = vld [vmem:[#allocation6] sm:$0xff]  }
  0x59   : > { %1634 = vmatprep.subr.bf16.mxu1 %v1826_v24 }
  0x5a   : > { %v378_v46 = vld [vmem:[#allocation2 + $0x8] sm:$0xee]  ;;  %v1880_v44 = vld [vmem:[#allocation2 + $0x4] ss:$8 sps:$4 sm:$0x1e]  }
  0x5b   : > { %1613 = vmatpush3.bf16.msra.mxu0 %v1827_v25  ;;  %v379_v47 = vsel %vm377_vm13, 0, %v378_v46  ;;  %v1195_v46 = vrot.slane %v1880_v44, 1 }
  0x5c   : > { %1635 = vmatpush3.bf16.msra.mxu1 %v1828_v26  ;;  %1614 = vmatprep.subr.bf16.mxu0 %v1829_v27  ;;  %380 = vst [vmem:[#allocation2 + $0x8] sm:$0xee] %v379_v47  ;;  %v799_v26 = vadd.s32 8, %v798_v22  ;;  %v1857_v47 = vld [vmem:[#allocation6 + $0x48] sm:$0xff]  }
  0x5d   : > { %1636 = vmatprep.subr.bf16.mxu1 %v1830_v28 }
  0x5f   : > { %1615 = vmatpush3.bf16.msra.mxu0 %v1831_v29  ;;  %v1553_v29 = vld [vmem:[%s2305_s5] ss:$0 sm:$0xff] }
  0x60   : > { %1637 = vmatpush3.bf16.msra.mxu1 %v1832_v30  ;;  %1616 = vmatprep.subr.bf16.mxu0 %v1833_v31 }
  0x61   : > { %1638 = vmatprep.subr.bf16.mxu1 %v1834_v32 }
  0x63   : > { %1617 = vmatpush3.bf16.msra.mxu0 %v1835_v33  ;;  %v417_v50 = vld [vmem:[#allocation2 + $0x8] sm:$0xff]  ;;  %v802_v33 = vadd.s32 4294967295, %v798_v22 }
  0x64   : > { %1639 = vmatpush3.bf16.msra.mxu1 %v1836_v34  ;;  %1695 = vmatprep.subr.bf16.mxu0 %v1975_v40  ;;  %v1516_v52 = vcombine.high %v349_v35, %v417_v50  ;;  %v1535_v53 = vcombine.low %v349_v35, %v417_v50  ;;  %v803_v34 = vadd.s32 4294967295, %v799_v26 }
  0x65   : > { %1715 = vmatprep.subr.bf16.mxu1 %v1975_v40  ;;  %vm804_vm0 = vcmp.ge.s32.totalorder %v802_v33, 0 }
  0x66   : > { %v479_v54 = vshrl.u32 %v1516_v52, 16  ;;  %v481_v55 = vshll.u32 %v1516_v52, 16  ;;  %767 = vmatprep.mubr.bf16.mxu1 %v1516_v52  ;;  %v467_v56 = vshrl.u32 %v1535_v53, 16  ;;  %v469_v57 = vshll.u32 %v1535_v53, 16 }
  0x67   : > { %768 = vmatmul.mubr.bf16.vlgmr.msra.gmra.mrb[0].mxu1 %v1535_v53  ;;  %vm807_vm1 = vcmp.lt.s32.totalorder %v803_v34, 8 }
  0x68   : > { %v483_v59 = vrot.slane %v481_v55, 1  ;;  %v471_v60 = vrot.slane %v469_v57, 1  ;;  %1716 = vmatpush3.bf16.msra.mxu1 %v1839_v49  ;;  %1731 = vmatprep.mubr.msk.bf16.mxu1 %vm1976_vm15, %v1975_v40  ;;  %v1858_v55 = vld [vmem:[#allocation4 + $0x80] sm:$0xff]   ;;  %v1862_v57 = vld [vmem:[#allocation6 + $0x10] sm:$0xff]  }
  0x69   : > { %1717 = vmatprep.subr.bf16.mxu1 %v1975_v40 }
  0x6a   : > { %v484_v62 = vor.u32 %v483_v59, %v479_v54  ;;  %v472_v63 = vor.u32 %v471_v60, %v467_v56  ;;  %v1860_v54 = vld [vmem:[#allocation6 + $0x50] sm:$0xff]   ;;  %v1861_v59 = vld [vmem:[#allocation4 + $0x88] sm:$0xff]   ;;  %v1865_v60 = vld [vmem:[#allocation6 + $0x18] sm:$0xff]  }
  0x6c   : > { %v489_v0 = vsel %vm465_vm14, %v484_v62, %v488_v48  ;;  %v477_v1 = vsel %vm465_vm14, %v472_v63, %v476_v51  ;;  %1718 = vmatpush3.bf16.msra.mxu1 %v1840_v58  ;;  %v1859_v51 = vld [vmem:[#allocation6 + $0x8] sm:$0xff]   ;;  %v1863_v58 = vld [vmem:[#allocation6 + $0x58] sm:$0xff]   ;;  %v1864_v62 = vld [vmem:[#allocation4 + $0x90] sm:$0xff]  }
  0x6d   : > { %620 = vmatprep.mubr.bf16.mxu0 %v489_v0  ;;  %1719 = vmatprep.subr.bf16.mxu1 %v1975_v40  ;;  %v1868_v63 = vld [vmem:[#allocation6 + $0x20] sm:$0xff]   ;;  %v1869_v0 = vld [vmem:[#allocation6 + $0x68] sm:$0xff]  }
  0x6e   : > { %621 = vmatmul.mubr.bf16.vlgmr.msra.gmra.mrb[0].mxu0 %v477_v1  ;;  %v1867_v1 = vld [vmem:[#allocation4 + $0x98] sm:$0xff]  }
  0x6f   : > { %1696 = vmatpush3.bf16.msra.mxu0 %v1841_v61  ;;  %1711 = vmatprep.mubr.msk.bf16.mxu0 %vm1976_vm15, %v1975_v40  ;;  %v1866_v61 = vld [vmem:[#allocation6 + $0x60] sm:$0xff]  }
  0x70   : > { %1697 = vmatprep.subr.bf16.mxu0 %v1975_v40  ;;  %1720 = vmatpush3.bf16.msra.mxu1 %v1842_v2  ;;  %v1871_v2 = vld [vmem:[#allocation6 + $0x28] sm:$0xff]  }
  0x71   : > { %1721 = vmatprep.subr.bf16.mxu1 %v1975_v40 }
  0x73   : > { %1698 = vmatpush3.bf16.msra.mxu0 %v1843_v3  ;;  %v1872_v3 = vld [vmem:[#allocation6 + $0x70] sm:$0xff]  }
  0x74   : > { %1699 = vmatprep.subr.bf16.mxu0 %v1975_v40  ;;  %1722 = vmatpush3.bf16.msra.mxu1 %v1844_v4  ;;  %v1870_v4 = vld [vmem:[#allocation4 + $0xa0] sm:$0xff]  }
  0x75   : > { %1723 = vmatprep.subr.bf16.mxu1 %v1975_v40 }
  0x77   : > { %1700 = vmatpush3.bf16.msra.mxu0 %v1845_v5  ;;  %v1874_v5 = vld [vmem:[#allocation6 + $0x30] sm:$0xff]  }
  0x78   : > { %1701 = vmatprep.subr.bf16.mxu0 %v1975_v40  ;;  %1724 = vmatpush3.bf16.msra.mxu1 %v1846_v6  ;;  %v1875_v6 = vld [vmem:[#allocation6 + $0x78] sm:$0xff]  }
  0x79   : > { %1725 = vmatprep.subr.bf16.mxu1 %v1975_v40 }
  0x7b   : > { %1702 = vmatpush3.bf16.msra.mxu0 %v1847_v7  ;;  %v1873_v7 = vld [vmem:[#allocation4 + $0xa8] sm:$0xff]  }
  0x7c   : > { %1703 = vmatprep.subr.bf16.mxu0 %v1975_v40  ;;  %1726 = vmatpush3.bf16.msra.mxu1 %v1848_v8  ;;  %v1878_v8 = vld [vmem:[#allocation2] ss:$8 sps:$4 sm:$0x1e]  }
  0x7d   : > { %1727 = vmatprep.subr.bf16.mxu1 %v1975_v40 }
  0x7f   : > { %1704 = vmatpush3.bf16.msra.mxu0 %v1849_v9  ;;  %v1877_v9 = vld [vmem:[#allocation6 + $0x38] sm:$0xff]  }
  0x80   : > { %1705 = vmatprep.subr.bf16.mxu0 %v1975_v40  ;;  %1728 = vmatpush3.bf16.msra.mxu1 %v1850_v10  ;;  %v1876_v10 = vld [vmem:[#allocation4 + $0xb0] sm:$0xff]  }
  0x81   : > { %1729 = vmatprep.subr.bf16.mxu1 %v1975_v40 }
  0x83   : > { %1706 = vmatpush3.bf16.msra.mxu0 %v1851_v11  ;;  %v1194_v11 = vrot.slane %v1878_v8, 1 }
  0x84   : > { %1707 = vmatprep.subr.bf16.mxu0 %v1975_v40  ;;  %1730 = vmatpush3.bf16.msra.mxu1 %v1852_v12  ;;  %v1881_v12 = vld [vmem:[#allocation4 + $0xb8] sm:$0xff]  }
  0x85   : > { %1673 = vmatprep.subr.bf16.mxu1 %v1854_v14 }
  0x87   : > { %1708 = vmatpush3.bf16.msra.mxu0 %v1853_v13 }
  0x88   : > { %1709 = vmatprep.subr.bf16.mxu0 %v1975_v40 }
  0x8b   : > { %1710 = vmatpush3.bf16.msra.mxu0 %v1855_v15 }
  0x8c   : > { %1735 = vmatprep.subr.bf16.mxu0 %v1975_v40 }
 0x13a   : > { %v1640_v16 = vpop.f32.mrb[0].mxu1 }
 0x13b   : > { %v1641_v18 = vpop.f32.mrb[1].mxu1 }
 0x13c   : > { %v1642_v19 = vadd.f32 %v1641_v18, %v1640_v16  ;;  %v1643_v20 = vpop.f32.mrb[2].mxu1 }
 0x13d   : > { %v1644_v21 = vpop.f32.mrb[3].mxu1 }
 0x13e   : > { %v1645_v23 = vadd.f32 %v1644_v21, %v1643_v20 }
 0x141   : > { %v1618_v24 = vpop.f32.mrb[0].mxu0 }
 0x142   : > { %v1619_v25 = vpop.f32.mrb[1].mxu0 }
 0x143   : > { %v1620_v27 = vadd.f32 %v1619_v25, %v1618_v24  ;;  %v1621_v28 = vpop.f32.mrb[2].mxu0 }
 0x144   : > { %v1622_v30 = vpop.f32.mrb[3].mxu0 }
 0x145   : > { %v770_v31 = vadd.f32 %v1642_v19, %v1620_v27  ;;  %v1623_v32 = vadd.f32 %v1622_v30, %v1621_v28  ;;  %v1578_v28 = vld [vmem:[%s2305_s5 + $0x2] ss:$0 sm:$0xff]  ;;  %v1597_v30 = vld [vmem:[%s2305_s5 + $0x1] ss:$0 sm:$0xff] }
 0x147   : > { %v781_v35 = vadd.f32 %v1553_v29, %v770_v31  ;;  %v773_v36 = vadd.f32 %v1645_v23, %v1623_v32 }
 0x149   : > { %v783_v37 = vmax.f32 %v781_v35, 0.0  ;;  %v782_v38 = vadd.f32 %v1553_v29, %v773_v36 }
 0x14b   : > { %v784_v39 = vmax.f32 %v782_v38, 0.0  ;;  %v814_v41 = vsel %vm804_vm0, %v783_v37, 0.0 }
 0x14d   : > { %v815_v42 = vsel %vm807_vm1, %v784_v39, 0.0 }
 0x14e   : > { %v816_v43 = vpack.c.bf16 %v815_v42, %v814_v41 }
 0x150   : > { %817 = vst [vmem:[#allocation3] sm:$0xff] %v816_v43 }
 0x157   : > { %v818_v48 = vld [vmem:[#allocation3] sm:$0xf] }
 0x158   : > { %v835_v49 = vld [vmem:[#allocation3] sm:$0x1f]  ;;  %1732 = vmatmul.mubr.bf16.vlgmr.msra.gmra.mrb[4].mxu1 %v818_v48 }
 0x159   : > { %v856_v50 = vshll.u32 %v835_v49, 16  ;;  %1674 = vmatpush3.bf16.msra.mxu1 %v1856_v45  ;;  %1326 = vmatprep.mubr.bf16.mxu1 %v1195_v46  ;;  %v854_v52 = vshrl.u32 %v835_v49, 16  ;;  %v1037_v13 = vld [vmem:[#allocation3] sm:$0x1e] }
 0x15a   : > { %1675 = vmatprep.subr.bf16.mxu1 %v1857_v47  ;;  %v1056_v14 = vrot.slane %v1037_v13, 1 }
 0x15b   : > { %v858_v53 = vrot.slane %v856_v50, 1 }
 0x15d   : > { %v859_v56 = vor.u32 %v858_v53, %v854_v52  ;;  %1676 = vmatpush3.bf16.msra.mxu1 %v1859_v51 }
 0x15e   : > { %1677 = vmatprep.subr.bf16.mxu1 %v1860_v54 }
 0x15f   : > { %1712 = vmatmul.mubr.bf16.vlgmr.msra.gmra.mrb[4].mxu0 %v859_v56 }
 0x160   : > { %1736 = vmatpush3.bf16.msra.mxu0 %v1858_v55  ;;  %1751 = vmatprep.mubr.msk.bf16.mxu0 %vm1976_vm15, %v1975_v40 }
 0x161   : > { %1737 = vmatprep.subr.bf16.mxu0 %v1975_v40  ;;  %1678 = vmatpush3.bf16.msra.mxu1 %v1862_v57 }
 0x162   : > { %1679 = vmatprep.subr.bf16.mxu1 %v1863_v58 }
 0x164   : > { %1738 = vmatpush3.bf16.msra.mxu0 %v1861_v59 }
 0x165   : > { %1739 = vmatprep.subr.bf16.mxu0 %v1975_v40  ;;  %1680 = vmatpush3.bf16.msra.mxu1 %v1865_v60 }
 0x166   : > { %1681 = vmatprep.subr.bf16.mxu1 %v1866_v61 }
 0x168   : > { %1740 = vmatpush3.bf16.msra.mxu0 %v1864_v62 }
 0x169   : > { %1741 = vmatprep.subr.bf16.mxu0 %v1975_v40  ;;  %1682 = vmatpush3.bf16.msra.mxu1 %v1868_v63 }
 0x16a   : > { %1683 = vmatprep.subr.bf16.mxu1 %v1869_v0 }
 0x16c   : > { %1742 = vmatpush3.bf16.msra.mxu0 %v1867_v1 }
 0x16d   : > { %1743 = vmatprep.subr.bf16.mxu0 %v1975_v40  ;;  %1684 = vmatpush3.bf16.msra.mxu1 %v1871_v2 }
 0x16e   : > { %1685 = vmatprep.subr.bf16.mxu1 %v1872_v3 }
 0x170   : > { %1744 = vmatpush3.bf16.msra.mxu0 %v1870_v4 }
 0x171   : > { %1745 = vmatprep.subr.bf16.mxu0 %v1975_v40  ;;  %1686 = vmatpush3.bf16.msra.mxu1 %v1874_v5 }
 0x172   : > { %1687 = vmatprep.subr.bf16.mxu1 %v1875_v6 }
 0x174   : > { %1746 = vmatpush3.bf16.msra.mxu0 %v1873_v7 }
 0x175   : > { %1747 = vmatprep.subr.bf16.mxu0 %v1975_v40  ;;  %1688 = vmatpush3.bf16.msra.mxu1 %v1877_v9 }
 0x178   : > { %1748 = vmatpush3.bf16.msra.mxu0 %v1876_v10  ;;  %1327 = vmatmul.mubr.bf16.vlgmr.msra.gmra.mrb[8].mxu1 %v1194_v11 }
 0x179   : > { %1749 = vmatprep.subr.bf16.mxu0 %v1975_v40 }
 0x17c   : > { %1750 = vmatpush3.bf16.msra.mxu0 %v1881_v12 }
 0x17f   : > { %1752 = vmatmul.mubr.bf16.vlgmr.msra.gmra.mrb[8].mxu0 %v1056_v14 }
 0x22b   : > { %v1031_v15 = vpop.f32.mrb[4].mxu1 }
 0x22c   : > { %v1733_v16 = vpop.f32.mrb[5].mxu1 }
 0x22d   : > { %v1034_v17 = vpop.f32.mrb[6].mxu1 }
 0x22e   : > { %v1734_v18 = vpop.f32.mrb[7].mxu1 }
 0x232   : > { %v943_v19 = vpop.f32.mrb[4].mxu0 }
 0x233   : > { %v1032_v20 = vadd.f32 %v1031_v15, %v943_v19  ;;  %v1713_v21 = vpop.f32.mrb[5].mxu0 }
 0x234   : > { %v946_v22 = vpop.f32.mrb[6].mxu0 }
 0x235   : > { %v1714_v23 = vpop.f32.mrb[7].mxu0 }
 0x24b   : > { %v1689_v24 = vpop.f32.mrb[8].mxu1 }
 0x24c   : > { %v1690_v25 = vpop.f32.mrb[9].mxu1 }
 0x24d   : > { %v1691_v26 = vadd.f32 %v1690_v25, %v1689_v24  ;;  %v1692_v27 = vpop.f32.mrb[10].mxu1 }
 0x24e   : > { %v1693_v40 = vpop.f32.mrb[11].mxu1 }
 0x24f   : > { %v1329_v31 = vadd.f32 %v1691_v26, %v1578_v28 }
 0x252   : > { %v1140_v29 = vpop.f32.mrb[8].mxu0 }
 0x253   : > { %v1146_v32 = vadd.f32 %v1140_v29, %v1032_v20  ;;  %v1753_v33 = vpop.f32.mrb[9].mxu0 }
 0x254   : > { %v1143_v34 = vpop.f32.mrb[10].mxu0 }
 0x255   : > { %v1339_v35 = vadd.f32 %v1597_v30, %v1146_v32  ;;  %v1754_v36 = vpop.f32.mrb[11].mxu0 }
 0x257   : > { %v1340_v37 = vadd.f32 %v1339_v35, %v1329_v31 }
 0x259   : > { %v1341_v38 = vmax.f32 %v1340_v37, 0.0 }
 0x25b   : > { %v1342_v39 = vpack.c.bf16 %v1341_v38, %v1341_v38 }
 0x25d   : > { %1343 = vst [vmem:[%s347_s15] sm:$0xf] %v1342_v39 }
 0x25e PF: > { %s18_s23 = sadd.s32 1, %s1968_s23   ;;  %s2321_s21 = smov %s1964_s22 }
 0x25f   : > { %p15_p8 = scmp.ge.s32.totalorder %s18_s23, 4   ;;  %s2322_s22 = smov %s2324_s25 }
 0x261   :  { %17 = sbr.rel (!%p15_p8) target bundleno = 3 (0x3), region = 93 }
 0x268   :  { %1369 = vsyncpa [#allocation5], 1 }
 0x269   :  { %1371 = vsyncpa [#allocation5 + $0x1], 1 }
 0x26a   :  { %1372 = vsyncpa [#allocation7], 1 }

</bundles_post_ra>
